<compile_context>
chip_gen: v5e
topology: v5e:2x2
jax: 0.10.0
libtpu: 0.0.40
codegen_flags: <defaults>
</compile_context>

<pallas_src>
import functools

import jax
import jax.numpy as jnp
from jax.experimental import pallas as pl
from jax.experimental.pallas import tpu as pltpu


def _gru_chunk_kernel(tok_ref,      # SMEM (T_pad,) int32   -- scalar prefetch
                      gi_tab_ref,   # VMEM (V, 1, 3H) f32   fused input projection (resident)
                      h0_ref,       # VMEM (1, H)    f32    initial hidden
                      whh_t_ref,    # VMEM (H, 3H)   f32    W_hh^T (resident)
                      bhn_ref,      # VMEM (1, H)    f32    b_hh_n (resident)
                      out_ref,      # VMEM (C, H)    f32    hidden for C steps
                      h_scr,        # VMEM (1, H)    f32    carried hidden (scratch)
                      *, chunk, seq_len, hidden):
    c = pl.program_id(0)
    H = hidden

    @pl.when(c == 0)
    def _():
        h_scr[...] = h0_ref[...]

    h = h_scr[...]                       # (1, H) f32, carried across chunks
    b_hn = bhn_ref[...]                  # (1, H) f32, hoisted out of the loop

    # Fully unrolled inner loop over the C timesteps of this chunk (static s),
    # so all output stores / gate slices use static offsets.
    for s in range(chunk):
        idx = c * chunk + s                                 # global timestep
        tok = tok_ref[idx]                                  # SMEM scalar read
        gi = gi_tab_ref[tok]                                # (1, 3H) in-VMEM row gather

        # Hidden projection on the MXU, f32 accumulation.  (This is the only
        # per-step matmul left; the x-projection lives in gi_tab.)
        gh = jnp.dot(h, whh_t_ref[...],
                     preferred_element_type=jnp.float32)    # (1, 3H)

        # PyTorch GRU gate order (r, z, n); slices are lane-aligned (H = 128k).
        r = jax.nn.sigmoid(gi[:, 0:H] + gh[:, 0:H])
        z = jax.nn.sigmoid(gi[:, H:2 * H] + gh[:, H:2 * H])
        n = jnp.tanh(gi[:, 2 * H:3 * H] + r * (gh[:, 2 * H:3 * H] + b_hn))
        h_new = n + z * (h - n)                             # == (1-z)*n + z*h

        if seq_len % chunk != 0:
            # Padded tail steps: freeze the hidden state so the carried state
            # (and final hidden) are exact; padded output rows are sliced off
            # in the wrapper.
            h_new = jnp.where(idx < seq_len, h_new, h)

        out_ref[pl.ds(s, 1), :] = h_new
        h = h_new

    h_scr[...] = h


def encoder_forward_seq(tokens, hidden0, params, *, chunk=8):
    """Encode a whole token sequence in a single pallas_call.

    tokens: (T,) int32; hidden0: (1, 1, H) float32.
    Returns (outputs (T, 1, H), final_hidden (1, 1, H)) -- PyTorch GRU layout.
    """
    gi_tab = params["gi_table"]          # (V, 1, 3H) f32
    whh_t = params["weight_hh_t"]        # (H, 3H)   f32
    b_hn = params["bias_hn"]             # (1, H)    f32

    V = gi_tab.shape[0]
    H = whh_t.shape[0]
    T = int(tokens.shape[0])
    n_chunks = -(-T // chunk)
    T_pad = n_chunks * chunk

    tok = jnp.clip(tokens.astype(jnp.int32), 0, V - 1)      # guard OOB gather
    if T_pad != T:
        tok = jnp.concatenate([tok, jnp.zeros((T_pad - T,), jnp.int32)])
    h0 = hidden0.reshape(1, H).astype(jnp.float32)

    kernel = functools.partial(_gru_chunk_kernel,
                               chunk=chunk, seq_len=T, hidden=H)
    const = lambda shape: pl.BlockSpec(shape, lambda c, tok_ref: (0,) * len(shape))

    out = pl.pallas_call(
        kernel,
        out_shape=jax.ShapeDtypeStruct((T_pad, H), jnp.float32),
        grid_spec=pltpu.PrefetchScalarGridSpec(
            num_scalar_prefetch=1,
            grid=(n_chunks,),
            in_specs=[
                const((V, 1, 3 * H)),     # fused gi table  (resident, in-kernel gather)
                const((1, H)),            # h0
                const((H, 3 * H)),        # W_hh^T          (resident)
                const((1, H)),            # b_hh_n          (resident)
            ],
            out_specs=pl.BlockSpec((chunk, H), lambda c, tok_ref: (c, 0)),
            scratch_shapes=[pltpu.VMEM((1, H), jnp.float32)],   # carried hidden
        ),
        compiler_params=pltpu.CompilerParams(
            dimension_semantics=("arbitrary",)),   # sequential recurrence
    )(tok, gi_tab, h0, whh_t, b_hn)

    outs = out[:T]
    return outs.reshape(T, 1, H), outs[T - 1].reshape(1, 1, H)


def encoder_forward(token, hidden, params):
    """Single-step forward matching the PyTorch Encoder.forward exactly.

    token: int32 array of shape (1,); hidden: (1, 1, H) float32.
    Returns (output, hidden_new), both (1, 1, H).
    """
    H = hidden.shape[-1]
    outs, hid = encoder_forward_seq(token.reshape(1).astype(jnp.int32),
                                    hidden, params)
    return outs.reshape(1, 1, H), hid


def init_params(key, input_size, hidden_size):
    """Deterministic synthetic parameters with PyTorch-shaped tensors."""
    k_emb, k_wih, k_whh, k_bih, k_bhh = jax.random.split(key, 5)
    H = hidden_size
    bound = 1.0 / jnp.sqrt(H)
    emb = jax.random.normal(k_emb, (input_size, H), jnp.float32)
    w_ih = jax.random.uniform(k_wih, (3 * H, H), jnp.float32, -bound, bound)
    w_hh = jax.random.uniform(k_whh, (3 * H, H), jnp.float32, -bound, bound)
    b_ih = jax.random.uniform(k_bih, (3 * H,), jnp.float32, -bound, bound)
    b_hh = jax.random.uniform(k_bhh, (3 * H,), jnp.float32, -bound, bound)
    return {"embedding": emb, "weight_ih": w_ih, "weight_hh": w_hh,
            "bias_ih": b_ih, "bias_hh": b_hh}


def prepare_params(raw):
    """One-time, parameter-only precompute (hoists the input projection).

    Builds the fused gi table: emb @ W_ih^T + (b_ih + [b_hh_r, b_hh_z, 0]).
    Only b_hh_n stays separate because PyTorch scales it by r inside the gate.
    For a large vocab this pre-pass would be a batched (T,H)x(H,3H) matmul over
    gathered embeddings instead of a full-table build.
    """
    emb, w_ih, w_hh = raw["embedding"], raw["weight_ih"], raw["weight_hh"]
    b_ih, b_hh = raw["bias_ih"], raw["bias_hh"]
    V, H = emb.shape
    b_x = jnp.concatenate([b_ih[:2 * H] + b_hh[:2 * H], b_ih[2 * H:]])
    gi_table = (emb @ w_ih.T + b_x).reshape(V, 1, 3 * H)     # (V, 1, 3H) f32
    return {
        "gi_table": gi_table,
        "weight_hh_t": jnp.asarray(w_hh.T, jnp.float32),     # (H, 3H)
        "bias_hn": b_hh[2 * H:].reshape(1, H),               # (1, H)
    }


def _reference_forward_seq(tokens, hidden0, raw):
    """Pure-JAX f32 reference of the PyTorch GRU recurrence."""
    emb, w_ih, w_hh = raw["embedding"], raw["weight_ih"], raw["weight_hh"]
    b_ih, b_hh = raw["bias_ih"], raw["bias_hh"]
    H = hidden0.shape[-1]
    h = hidden0.reshape(1, H).astype(jnp.float32)
    outs = []
    for t in tokens:
        x = emb[t].reshape(1, H)
        gi = x @ w_ih.T + b_ih
        gh = h @ w_hh.T + b_hh
        r = jax.nn.sigmoid(gi[:, :H] + gh[:, :H])
        z = jax.nn.sigmoid(gi[:, H:2 * H] + gh[:, H:2 * H])
        n = jnp.tanh(gi[:, 2 * H:] + r * gh[:, 2 * H:])
        h = (1.0 - z) * n + z * h
        outs.append(h)
    return jnp.stack(outs, axis=0), h.reshape(1, 1, H)


if __name__ == "__main__":
    vocab_size = 32
    hidden_size = 128     # multiple of 128 -> lane-aligned gate slices & outputs
    seq_len = 8

    key = jax.random.PRNGKey(0)
    k_params, k_hidden, k_tok = jax.random.split(key, 3)
    raw = init_params(k_params, vocab_size, hidden_size)
    params = prepare_params(raw)

    tokens = jax.random.randint(k_tok, (seq_len,), 0, vocab_size, dtype=jnp.int32)
    hidden0 = jax.random.normal(k_hidden, (1, 1, hidden_size), jnp.float32)

    # Single-step call: exact PyTorch Encoder.forward semantics.
    out1, hid1 = encoder_forward(tokens[:1], hidden0, params)
    out1 = jax.block_until_ready(out1)
    hid1 = jax.block_until_ready(hid1)

    # Full-sequence encode in one pallas_call (T multiple of the chunk size).
    outs, hid = encoder_forward_seq(tokens, hidden0, params)
    outs = jax.block_until_ready(outs)
    hid = jax.block_until_ready(hid)

    # Ragged length (exercises the padded / masked tail path).
    outs5, hid5 = encoder_forward_seq(tokens[:5], hidden0, params)
    outs5 = jax.block_until_ready(outs5)
    hid5 = jax.block_until_ready(hid5)

    ref_outs, ref_hid = _reference_forward_seq(tokens, hidden0, raw)
    ref_outs5, ref_hid5 = _reference_forward_seq(tokens[:5], hidden0, raw)

    assert out1.shape == (1, 1, hidden_size) and hid1.shape == (1, 1, hidden_size)
    assert outs.shape == (seq_len, 1, hidden_size)
    ref_step0 = ref_outs[0:1].reshape(1, 1, hidden_size)
    assert jnp.allclose(out1, ref_step0, atol=1e-3, rtol=1e-3)
    assert jnp.allclose(hid1, ref_step0, atol=1e-3, rtol=1e-3)
    assert jnp.allclose(outs, ref_outs, atol=1e-3, rtol=1e-3)
    assert jnp.allclose(hid, ref_hid, atol=1e-3, rtol=1e-3)
    assert jnp.allclose(outs5, ref_outs5, atol=1e-3, rtol=1e-3)
    assert jnp.allclose(hid5, ref_hid5, atol=1e-3, rtol=1e-3)

    print("KERNEL_OK")
</pallas_src>

<mosaic_0001>
module attributes {stable_mosaic.version = 11 : i64} {
  func.func @_gru_chunk_kernel(%arg0: i32, %arg1: memref<8xi32, #tpu.memory_space<smem>>, %arg2: memref<32x1x384xf32, #tpu.memory_space<vmem>>, %arg3: memref<1x128xf32, #tpu.memory_space<vmem>>, %arg4: memref<128x384xf32, #tpu.memory_space<vmem>>, %arg5: memref<1x128xf32, #tpu.memory_space<vmem>>, %arg6: memref<8x128xf32, #tpu.memory_space<vmem>>, %arg7: memref<1x128xf32, #tpu.memory_space<vmem>>) attributes {dimension_semantics = [#tpu.dimension_semantics<arbitrary>], iteration_bounds = array<i64: 1>, scalar_prefetch = 1 : i64, scratch_operands = 1 : i64, tpu.core_type = #tpu.core_type<tc>, window_params = [{pipeline_mode = #tpu.pipeline_mode<synchronous>, transform_indices = @transform_0, window_bounds = array<i64: 32, 1, 384>}, {pipeline_mode = #tpu.pipeline_mode<synchronous>, transform_indices = @transform_1, window_bounds = array<i64: 1, 128>}, {pipeline_mode = #tpu.pipeline_mode<synchronous>, transform_indices = @transform_2, window_bounds = array<i64: 128, 384>}, {pipeline_mode = #tpu.pipeline_mode<synchronous>, transform_indices = @transform_3, window_bounds = array<i64: 1, 128>}, {transform_indices = @transform_4, window_bounds = array<i64: 8, 128>}]} {
    %c0_i32 = arith.constant 0 : i32
    %0 = arith.cmpi eq, %arg0, %c0_i32 : i32
    %1 = arith.extui %0 : i1 to i32
    %c0_i32_0 = arith.constant 0 : i32
    %2 = arith.cmpi ne, %1, %c0_i32_0 : i32
    scf.if %2 {
      %c0_86 = arith.constant 0 : index
      %c0_87 = arith.constant 0 : index
      %302 = vector.load %arg3[%c0_86, %c0_87] : memref<1x128xf32, #tpu.memory_space<vmem>>, vector<1x128xf32>
      %c0_88 = arith.constant 0 : index
      %c0_89 = arith.constant 0 : index
      %303 = vector.load %arg7[%c0_88, %c0_89] : memref<1x128xf32, #tpu.memory_space<vmem>>, vector<1x128xf32>
      tpu.vector_store %arg7[%c0_88, %c0_89], %302 {strides = array<i32>} : memref<1x128xf32, #tpu.memory_space<vmem>>, vector<1x128xf32>,
    } else {
    }
    %c0 = arith.constant 0 : index
    %c0_1 = arith.constant 0 : index
    %3 = vector.load %arg7[%c0, %c0_1] : memref<1x128xf32, #tpu.memory_space<vmem>>, vector<1x128xf32>
    %c0_2 = arith.constant 0 : index
    %c0_3 = arith.constant 0 : index
    %4 = vector.load %arg5[%c0_2, %c0_3] : memref<1x128xf32, #tpu.memory_space<vmem>>, vector<1x128xf32>
    %c8_i32 = arith.constant 8 : i32
    %5 = arith.muli %arg0, %c8_i32 : i32
    %c0_i32_4 = arith.constant 0 : i32
    %6 = arith.addi %5, %c0_i32_4 : i32
    %7 = arith.index_cast %6 : i32 to index
    %8 = memref.load %arg1[%7] : memref<8xi32, #tpu.memory_space<smem>>
    %9 = arith.index_cast %8 : i32 to index
    %c0_5 = arith.constant 0 : index
    %c0_6 = arith.constant 0 : index
    %10 = vector.load %arg2[%9, %c0_5, %c0_6] : memref<32x1x384xf32, #tpu.memory_space<vmem>>, vector<1x1x384xf32>
    %11 = vector.shape_cast %10 : vector<1x1x384xf32> to vector<1x384xf32>
    %c0_7 = arith.constant 0 : index
    %c0_8 = arith.constant 0 : index
    %12 = vector.load %arg4[%c0_7, %c0_8] : memref<128x384xf32, #tpu.memory_space<vmem>>, vector<128x384xf32>
    %cst = arith.constant dense<0.000000e+00> : vector<1x384xf32>
    %13 = tpu.matmul %3, %12, %cst {dimension_numbers = #tpu.dot_dimension_numbers<[1], [0], [0], [1], [0, 0, 1, 1], [], []>} : vector<1x128xf32>, vector<128x384xf32>, vector<1x384xf32> -> vector<1x384xf32>
    %14 = vector.extract_strided_slice %11 {offsets = [0, 0], sizes = [1, 128], strides = [1, 1]} : vector<1x384xf32> to vector<1x128xf32>
    %15 = vector.extract_strided_slice %13 {offsets = [0, 0], sizes = [1, 128], strides = [1, 1]} : vector<1x384xf32> to vector<1x128xf32>
    %16 = arith.addf %14, %15 : vector<1x128xf32>
    %17 = arith.negf %16 : vector<1x128xf32>
    %18 = math.exp %17 : vector<1x128xf32>
    %cst_9 = arith.constant 1.000000e+00 : f32
    %19 = vector.broadcast %cst_9 : f32 to vector<1x128xf32>
    %20 = arith.addf %19, %18 : vector<1x128xf32>
    %21 = arith.divf %19, %20 : vector<1x128xf32>
    %22 = vector.extract_strided_slice %11 {offsets = [0, 128], sizes = [1, 128], strides = [1, 1]} : vector<1x384xf32> to vector<1x128xf32>
    %23 = vector.extract_strided_slice %13 {offsets = [0, 128], sizes = [1, 128], strides = [1, 1]} : vector<1x384xf32> to vector<1x128xf32>
    %24 = arith.addf %22, %23 : vector<1x128xf32>
    %25 = arith.negf %24 : vector<1x128xf32>
    %26 = math.exp %25 : vector<1x128xf32>
    %cst_10 = arith.constant 1.000000e+00 : f32
    %27 = vector.broadcast %cst_10 : f32 to vector<1x128xf32>
    %28 = arith.addf %27, %26 : vector<1x128xf32>
    %29 = arith.divf %27, %28 : vector<1x128xf32>
    %30 = vector.extract_strided_slice %11 {offsets = [0, 256], sizes = [1, 128], strides = [1, 1]} : vector<1x384xf32> to vector<1x128xf32>
    %31 = vector.extract_strided_slice %13 {offsets = [0, 256], sizes = [1, 128], strides = [1, 1]} : vector<1x384xf32> to vector<1x128xf32>
    %32 = arith.addf %31, %4 : vector<1x128xf32>
    %33 = arith.mulf %21, %32 : vector<1x128xf32>
    %34 = arith.addf %30, %33 : vector<1x128xf32>
    %35 = math.tanh %34 : vector<1x128xf32>
    %36 = arith.subf %3, %35 : vector<1x128xf32>
    %37 = arith.mulf %29, %36 : vector<1x128xf32>
    %38 = arith.addf %35, %37 : vector<1x128xf32>
    %c1_i32 = arith.constant 1 : i32
    %39 = arith.cmpi slt, %6, %c1_i32 : i32
    %40 = arith.select %39, %38, %3 : vector<1x128xf32>
    %c0_11 = arith.constant 0 : index
    %c0_12 = arith.constant 0 : index
    %41 = vector.load %arg6[%c0_11, %c0_12] : memref<8x128xf32, #tpu.memory_space<vmem>>, vector<1x128xf32>
    tpu.vector_store %arg6[%c0_11, %c0_12], %40 {strides = array<i32>} : memref<8x128xf32, #tpu.memory_space<vmem>>, vector<1x128xf32>,
    %c8_i32_13 = arith.constant 8 : i32
    %42 = arith.muli %arg0, %c8_i32_13 : i32
    %c1_i32_14 = arith.constant 1 : i32
    %43 = arith.addi %42, %c1_i32_14 : i32
    %44 = arith.index_cast %43 : i32 to index
    %45 = memref.load %arg1[%44] : memref<8xi32, #tpu.memory_space<smem>>
    %46 = arith.index_cast %45 : i32 to index
    %c0_15 = arith.constant 0 : index
    %c0_16 = arith.constant 0 : index
    %47 = vector.load %arg2[%46, %c0_15, %c0_16] : memref<32x1x384xf32, #tpu.memory_space<vmem>>, vector<1x1x384xf32>
    %48 = vector.shape_cast %47 : vector<1x1x384xf32> to vector<1x384xf32>
    %c0_17 = arith.constant 0 : index
    %c0_18 = arith.constant 0 : index
    %49 = vector.load %arg4[%c0_17, %c0_18] : memref<128x384xf32, #tpu.memory_space<vmem>>, vector<128x384xf32>
    %cst_19 = arith.constant dense<0.000000e+00> : vector<1x384xf32>
    %50 = tpu.matmul %40, %49, %cst_19 {dimension_numbers = #tpu.dot_dimension_numbers<[1], [0], [0], [1], [0, 0, 1, 1], [], []>} : vector<1x128xf32>, vector<128x384xf32>, vector<1x384xf32> -> vector<1x384xf32>
    %51 = vector.extract_strided_slice %48 {offsets = [0, 0], sizes = [1, 128], strides = [1, 1]} : vector<1x384xf32> to vector<1x128xf32>
    %52 = vector.extract_strided_slice %50 {offsets = [0, 0], sizes = [1, 128], strides = [1, 1]} : vector<1x384xf32> to vector<1x128xf32>
    %53 = arith.addf %51, %52 : vector<1x128xf32>
    %54 = arith.negf %53 : vector<1x128xf32>
    %55 = math.exp %54 : vector<1x128xf32>
    %cst_20 = arith.constant 1.000000e+00 : f32
    %56 = vector.broadcast %cst_20 : f32 to vector<1x128xf32>
    %57 = arith.addf %56, %55 : vector<1x128xf32>
    %58 = arith.divf %56, %57 : vector<1x128xf32>
    %59 = vector.extract_strided_slice %48 {offsets = [0, 128], sizes = [1, 128], strides = [1, 1]} : vector<1x384xf32> to vector<1x128xf32>
    %60 = vector.extract_strided_slice %50 {offsets = [0, 128], sizes = [1, 128], strides = [1, 1]} : vector<1x384xf32> to vector<1x128xf32>
    %61 = arith.addf %59, %60 : vector<1x128xf32>
    %62 = arith.negf %61 : vector<1x128xf32>
    %63 = math.exp %62 : vector<1x128xf32>
    %cst_21 = arith.constant 1.000000e+00 : f32
    %64 = vector.broadcast %cst_21 : f32 to vector<1x128xf32>
    %65 = arith.addf %64, %63 : vector<1x128xf32>
    %66 = arith.divf %64, %65 : vector<1x128xf32>
    %67 = vector.extract_strided_slice %48 {offsets = [0, 256], sizes = [1, 128], strides = [1, 1]} : vector<1x384xf32> to vector<1x128xf32>
    %68 = vector.extract_strided_slice %50 {offsets = [0, 256], sizes = [1, 128], strides = [1, 1]} : vector<1x384xf32> to vector<1x128xf32>
    %69 = arith.addf %68, %4 : vector<1x128xf32>
    %70 = arith.mulf %58, %69 : vector<1x128xf32>
    %71 = arith.addf %67, %70 : vector<1x128xf32>
    %72 = math.tanh %71 : vector<1x128xf32>
    %73 = arith.subf %40, %72 : vector<1x128xf32>
    %74 = arith.mulf %66, %73 : vector<1x128xf32>
    %75 = arith.addf %72, %74 : vector<1x128xf32>
    %c1_i32_22 = arith.constant 1 : i32
    %76 = arith.cmpi slt, %43, %c1_i32_22 : i32
    %77 = arith.select %76, %75, %40 : vector<1x128xf32>
    %c1 = arith.constant 1 : index
    %c0_23 = arith.constant 0 : index
    %78 = vector.load %arg6[%c1, %c0_23] : memref<8x128xf32, #tpu.memory_space<vmem>>, vector<1x128xf32>
    tpu.vector_store %arg6[%c1, %c0_23], %77 {strides = array<i32>} : memref<8x128xf32, #tpu.memory_space<vmem>>, vector<1x128xf32>,
    %c8_i32_24 = arith.constant 8 : i32
    %79 = arith.muli %arg0, %c8_i32_24 : i32
    %c2_i32 = arith.constant 2 : i32
    %80 = arith.addi %79, %c2_i32 : i32
    %81 = arith.index_cast %80 : i32 to index
    %82 = memref.load %arg1[%81] : memref<8xi32, #tpu.memory_space<smem>>
    %83 = arith.index_cast %82 : i32 to index
    %c0_25 = arith.constant 0 : index
    %c0_26 = arith.constant 0 : index
    %84 = vector.load %arg2[%83, %c0_25, %c0_26] : memref<32x1x384xf32, #tpu.memory_space<vmem>>, vector<1x1x384xf32>
    %85 = vector.shape_cast %84 : vector<1x1x384xf32> to vector<1x384xf32>
    %c0_27 = arith.constant 0 : index
    %c0_28 = arith.constant 0 : index
    %86 = vector.load %arg4[%c0_27, %c0_28] : memref<128x384xf32, #tpu.memory_space<vmem>>, vector<128x384xf32>
    %cst_29 = arith.constant dense<0.000000e+00> : vector<1x384xf32>
    %87 = tpu.matmul %77, %86, %cst_29 {dimension_numbers = #tpu.dot_dimension_numbers<[1], [0], [0], [1], [0, 0, 1, 1], [], []>} : vector<1x128xf32>, vector<128x384xf32>, vector<1x384xf32> -> vector<1x384xf32>
    %88 = vector.extract_strided_slice %85 {offsets = [0, 0], sizes = [1, 128], strides = [1, 1]} : vector<1x384xf32> to vector<1x128xf32>
    %89 = vector.extract_strided_slice %87 {offsets = [0, 0], sizes = [1, 128], strides = [1, 1]} : vector<1x384xf32> to vector<1x128xf32>
    %90 = arith.addf %88, %89 : vector<1x128xf32>
    %91 = arith.negf %90 : vector<1x128xf32>
    %92 = math.exp %91 : vector<1x128xf32>
    %cst_30 = arith.constant 1.000000e+00 : f32
    %93 = vector.broadcast %cst_30 : f32 to vector<1x128xf32>
    %94 = arith.addf %93, %92 : vector<1x128xf32>
    %95 = arith.divf %93, %94 : vector<1x128xf32>
    %96 = vector.extract_strided_slice %85 {offsets = [0, 128], sizes = [1, 128], strides = [1, 1]} : vector<1x384xf32> to vector<1x128xf32>
    %97 = vector.extract_strided_slice %87 {offsets = [0, 128], sizes = [1, 128], strides = [1, 1]} : vector<1x384xf32> to vector<1x128xf32>
    %98 = arith.addf %96, %97 : vector<1x128xf32>
    %99 = arith.negf %98 : vector<1x128xf32>
    %100 = math.exp %99 : vector<1x128xf32>
    %cst_31 = arith.constant 1.000000e+00 : f32
    %101 = vector.broadcast %cst_31 : f32 to vector<1x128xf32>
    %102 = arith.addf %101, %100 : vector<1x128xf32>
    %103 = arith.divf %101, %102 : vector<1x128xf32>
    %104 = vector.extract_strided_slice %85 {offsets = [0, 256], sizes = [1, 128], strides = [1, 1]} : vector<1x384xf32> to vector<1x128xf32>
    %105 = vector.extract_strided_slice %87 {offsets = [0, 256], sizes = [1, 128], strides = [1, 1]} : vector<1x384xf32> to vector<1x128xf32>
    %106 = arith.addf %105, %4 : vector<1x128xf32>
    %107 = arith.mulf %95, %106 : vector<1x128xf32>
    %108 = arith.addf %104, %107 : vector<1x128xf32>
    %109 = math.tanh %108 : vector<1x128xf32>
    %110 = arith.subf %77, %109 : vector<1x128xf32>
    %111 = arith.mulf %103, %110 : vector<1x128xf32>
    %112 = arith.addf %109, %111 : vector<1x128xf32>
    %c1_i32_32 = arith.constant 1 : i32
    %113 = arith.cmpi slt, %80, %c1_i32_32 : i32
    %114 = arith.select %113, %112, %77 : vector<1x128xf32>
    %c2 = arith.constant 2 : index
    %c0_33 = arith.constant 0 : index
    %115 = vector.load %arg6[%c2, %c0_33] : memref<8x128xf32, #tpu.memory_space<vmem>>, vector<1x128xf32>
    tpu.vector_store %arg6[%c2, %c0_33], %114 {strides = array<i32>} : memref<8x128xf32, #tpu.memory_space<vmem>>, vector<1x128xf32>,
    %c8_i32_34 = arith.constant 8 : i32
    %116 = arith.muli %arg0, %c8_i32_34 : i32
    %c3_i32 = arith.constant 3 : i32
    %117 = arith.addi %116, %c3_i32 : i32
    %118 = arith.index_cast %117 : i32 to index
    %119 = memref.load %arg1[%118] : memref<8xi32, #tpu.memory_space<smem>>
    %120 = arith.index_cast %119 : i32 to index
    %c0_35 = arith.constant 0 : index
    %c0_36 = arith.constant 0 : index
    %121 = vector.load %arg2[%120, %c0_35, %c0_36] : memref<32x1x384xf32, #tpu.memory_space<vmem>>, vector<1x1x384xf32>
    %122 = vector.shape_cast %121 : vector<1x1x384xf32> to vector<1x384xf32>
    %c0_37 = arith.constant 0 : index
    %c0_38 = arith.constant 0 : index
    %123 = vector.load %arg4[%c0_37, %c0_38] : memref<128x384xf32, #tpu.memory_space<vmem>>, vector<128x384xf32>
    %cst_39 = arith.constant dense<0.000000e+00> : vector<1x384xf32>
    %124 = tpu.matmul %114, %123, %cst_39 {dimension_numbers = #tpu.dot_dimension_numbers<[1], [0], [0], [1], [0, 0, 1, 1], [], []>} : vector<1x128xf32>, vector<128x384xf32>, vector<1x384xf32> -> vector<1x384xf32>
    %125 = vector.extract_strided_slice %122 {offsets = [0, 0], sizes = [1, 128], strides = [1, 1]} : vector<1x384xf32> to vector<1x128xf32>
    %126 = vector.extract_strided_slice %124 {offsets = [0, 0], sizes = [1, 128], strides = [1, 1]} : vector<1x384xf32> to vector<1x128xf32>
    %127 = arith.addf %125, %126 : vector<1x128xf32>
    %128 = arith.negf %127 : vector<1x128xf32>
    %129 = math.exp %128 : vector<1x128xf32>
    %cst_40 = arith.constant 1.000000e+00 : f32
    %130 = vector.broadcast %cst_40 : f32 to vector<1x128xf32>
    %131 = arith.addf %130, %129 : vector<1x128xf32>
    %132 = arith.divf %130, %131 : vector<1x128xf32>
    %133 = vector.extract_strided_slice %122 {offsets = [0, 128], sizes = [1, 128], strides = [1, 1]} : vector<1x384xf32> to vector<1x128xf32>
    %134 = vector.extract_strided_slice %124 {offsets = [0, 128], sizes = [1, 128], strides = [1, 1]} : vector<1x384xf32> to vector<1x128xf32>
    %135 = arith.addf %133, %134 : vector<1x128xf32>
    %136 = arith.negf %135 : vector<1x128xf32>
    %137 = math.exp %136 : vector<1x128xf32>
    %cst_41 = arith.constant 1.000000e+00 : f32
    %138 = vector.broadcast %cst_41 : f32 to vector<1x128xf32>
    %139 = arith.addf %138, %137 : vector<1x128xf32>
    %140 = arith.divf %138, %139 : vector<1x128xf32>
    %141 = vector.extract_strided_slice %122 {offsets = [0, 256], sizes = [1, 128], strides = [1, 1]} : vector<1x384xf32> to vector<1x128xf32>
    %142 = vector.extract_strided_slice %124 {offsets = [0, 256], sizes = [1, 128], strides = [1, 1]} : vector<1x384xf32> to vector<1x128xf32>
    %143 = arith.addf %142, %4 : vector<1x128xf32>
    %144 = arith.mulf %132, %143 : vector<1x128xf32>
    %145 = arith.addf %141, %144 : vector<1x128xf32>
    %146 = math.tanh %145 : vector<1x128xf32>
    %147 = arith.subf %114, %146 : vector<1x128xf32>
    %148 = arith.mulf %140, %147 : vector<1x128xf32>
    %149 = arith.addf %146, %148 : vector<1x128xf32>
    %c1_i32_42 = arith.constant 1 : i32
    %150 = arith.cmpi slt, %117, %c1_i32_42 : i32
    %151 = arith.select %150, %149, %114 : vector<1x128xf32>
    %c3 = arith.constant 3 : index
    %c0_43 = arith.constant 0 : index
    %152 = vector.load %arg6[%c3, %c0_43] : memref<8x128xf32, #tpu.memory_space<vmem>>, vector<1x128xf32>
    tpu.vector_store %arg6[%c3, %c0_43], %151 {strides = array<i32>} : memref<8x128xf32, #tpu.memory_space<vmem>>, vector<1x128xf32>,
    %c8_i32_44 = arith.constant 8 : i32
    %153 = arith.muli %arg0, %c8_i32_44 : i32
    %c4_i32 = arith.constant 4 : i32
    %154 = arith.addi %153, %c4_i32 : i32
    %155 = arith.index_cast %154 : i32 to index
    %156 = memref.load %arg1[%155] : memref<8xi32, #tpu.memory_space<smem>>
    %157 = arith.index_cast %156 : i32 to index
    %c0_45 = arith.constant 0 : index
    %c0_46 = arith.constant 0 : index
    %158 = vector.load %arg2[%157, %c0_45, %c0_46] : memref<32x1x384xf32, #tpu.memory_space<vmem>>, vector<1x1x384xf32>
    %159 = vector.shape_cast %158 : vector<1x1x384xf32> to vector<1x384xf32>
    %c0_47 = arith.constant 0 : index
    %c0_48 = arith.constant 0 : index
    %160 = vector.load %arg4[%c0_47, %c0_48] : memref<128x384xf32, #tpu.memory_space<vmem>>, vector<128x384xf32>
    %cst_49 = arith.constant dense<0.000000e+00> : vector<1x384xf32>
    %161 = tpu.matmul %151, %160, %cst_49 {dimension_numbers = #tpu.dot_dimension_numbers<[1], [0], [0], [1], [0, 0, 1, 1], [], []>} : vector<1x128xf32>, vector<128x384xf32>, vector<1x384xf32> -> vector<1x384xf32>
    %162 = vector.extract_strided_slice %159 {offsets = [0, 0], sizes = [1, 128], strides = [1, 1]} : vector<1x384xf32> to vector<1x128xf32>
    %163 = vector.extract_strided_slice %161 {offsets = [0, 0], sizes = [1, 128], strides = [1, 1]} : vector<1x384xf32> to vector<1x128xf32>
    %164 = arith.addf %162, %163 : vector<1x128xf32>
    %165 = arith.negf %164 : vector<1x128xf32>
    %166 = math.exp %165 : vector<1x128xf32>
    %cst_50 = arith.constant 1.000000e+00 : f32
    %167 = vector.broadcast %cst_50 : f32 to vector<1x128xf32>
    %168 = arith.addf %167, %166 : vector<1x128xf32>
    %169 = arith.divf %167, %168 : vector<1x128xf32>
    %170 = vector.extract_strided_slice %159 {offsets = [0, 128], sizes = [1, 128], strides = [1, 1]} : vector<1x384xf32> to vector<1x128xf32>
    %171 = vector.extract_strided_slice %161 {offsets = [0, 128], sizes = [1, 128], strides = [1, 1]} : vector<1x384xf32> to vector<1x128xf32>
    %172 = arith.addf %170, %171 : vector<1x128xf32>
    %173 = arith.negf %172 : vector<1x128xf32>
    %174 = math.exp %173 : vector<1x128xf32>
    %cst_51 = arith.constant 1.000000e+00 : f32
    %175 = vector.broadcast %cst_51 : f32 to vector<1x128xf32>
    %176 = arith.addf %175, %174 : vector<1x128xf32>
    %177 = arith.divf %175, %176 : vector<1x128xf32>
    %178 = vector.extract_strided_slice %159 {offsets = [0, 256], sizes = [1, 128], strides = [1, 1]} : vector<1x384xf32> to vector<1x128xf32>
    %179 = vector.extract_strided_slice %161 {offsets = [0, 256], sizes = [1, 128], strides = [1, 1]} : vector<1x384xf32> to vector<1x128xf32>
    %180 = arith.addf %179, %4 : vector<1x128xf32>
    %181 = arith.mulf %169, %180 : vector<1x128xf32>
    %182 = arith.addf %178, %181 : vector<1x128xf32>
    %183 = math.tanh %182 : vector<1x128xf32>
    %184 = arith.subf %151, %183 : vector<1x128xf32>
    %185 = arith.mulf %177, %184 : vector<1x128xf32>
    %186 = arith.addf %183, %185 : vector<1x128xf32>
    %c1_i32_52 = arith.constant 1 : i32
    %187 = arith.cmpi slt, %154, %c1_i32_52 : i32
    %188 = arith.select %187, %186, %151 : vector<1x128xf32>
    %c4 = arith.constant 4 : index
    %c0_53 = arith.constant 0 : index
    %189 = vector.load %arg6[%c4, %c0_53] : memref<8x128xf32, #tpu.memory_space<vmem>>, vector<1x128xf32>
    tpu.vector_store %arg6[%c4, %c0_53], %188 {strides = array<i32>} : memref<8x128xf32, #tpu.memory_space<vmem>>, vector<1x128xf32>,
    %c8_i32_54 = arith.constant 8 : i32
    %190 = arith.muli %arg0, %c8_i32_54 : i32
    %c5_i32 = arith.constant 5 : i32
    %191 = arith.addi %190, %c5_i32 : i32
    %192 = arith.index_cast %191 : i32 to index
    %193 = memref.load %arg1[%192] : memref<8xi32, #tpu.memory_space<smem>>
    %194 = arith.index_cast %193 : i32 to index
    %c0_55 = arith.constant 0 : index
    %c0_56 = arith.constant 0 : index
    %195 = vector.load %arg2[%194, %c0_55, %c0_56] : memref<32x1x384xf32, #tpu.memory_space<vmem>>, vector<1x1x384xf32>
    %196 = vector.shape_cast %195 : vector<1x1x384xf32> to vector<1x384xf32>
    %c0_57 = arith.constant 0 : index
    %c0_58 = arith.constant 0 : index
    %197 = vector.load %arg4[%c0_57, %c0_58] : memref<128x384xf32, #tpu.memory_space<vmem>>, vector<128x384xf32>
    %cst_59 = arith.constant dense<0.000000e+00> : vector<1x384xf32>
    %198 = tpu.matmul %188, %197, %cst_59 {dimension_numbers = #tpu.dot_dimension_numbers<[1], [0], [0], [1], [0, 0, 1, 1], [], []>} : vector<1x128xf32>, vector<128x384xf32>, vector<1x384xf32> -> vector<1x384xf32>
    %199 = vector.extract_strided_slice %196 {offsets = [0, 0], sizes = [1, 128], strides = [1, 1]} : vector<1x384xf32> to vector<1x128xf32>
    %200 = vector.extract_strided_slice %198 {offsets = [0, 0], sizes = [1, 128], strides = [1, 1]} : vector<1x384xf32> to vector<1x128xf32>
    %201 = arith.addf %199, %200 : vector<1x128xf32>
    %202 = arith.negf %201 : vector<1x128xf32>
    %203 = math.exp %202 : vector<1x128xf32>
    %cst_60 = arith.constant 1.000000e+00 : f32
    %204 = vector.broadcast %cst_60 : f32 to vector<1x128xf32>
    %205 = arith.addf %204, %203 : vector<1x128xf32>
    %206 = arith.divf %204, %205 : vector<1x128xf32>
    %207 = vector.extract_strided_slice %196 {offsets = [0, 128], sizes = [1, 128], strides = [1, 1]} : vector<1x384xf32> to vector<1x128xf32>
    %208 = vector.extract_strided_slice %198 {offsets = [0, 128], sizes = [1, 128], strides = [1, 1]} : vector<1x384xf32> to vector<1x128xf32>
    %209 = arith.addf %207, %208 : vector<1x128xf32>
    %210 = arith.negf %209 : vector<1x128xf32>
    %211 = math.exp %210 : vector<1x128xf32>
    %cst_61 = arith.constant 1.000000e+00 : f32
    %212 = vector.broadcast %cst_61 : f32 to vector<1x128xf32>
    %213 = arith.addf %212, %211 : vector<1x128xf32>
    %214 = arith.divf %212, %213 : vector<1x128xf32>
    %215 = vector.extract_strided_slice %196 {offsets = [0, 256], sizes = [1, 128], strides = [1, 1]} : vector<1x384xf32> to vector<1x128xf32>
    %216 = vector.extract_strided_slice %198 {offsets = [0, 256], sizes = [1, 128], strides = [1, 1]} : vector<1x384xf32> to vector<1x128xf32>
    %217 = arith.addf %216, %4 : vector<1x128xf32>
    %218 = arith.mulf %206, %217 : vector<1x128xf32>
    %219 = arith.addf %215, %218 : vector<1x128xf32>
    %220 = math.tanh %219 : vector<1x128xf32>
    %221 = arith.subf %188, %220 : vector<1x128xf32>
    %222 = arith.mulf %214, %221 : vector<1x128xf32>
    %223 = arith.addf %220, %222 : vector<1x128xf32>
    %c1_i32_62 = arith.constant 1 : i32
    %224 = arith.cmpi slt, %191, %c1_i32_62 : i32
    %225 = arith.select %224, %223, %188 : vector<1x128xf32>
    %c5 = arith.constant 5 : index
    %c0_63 = arith.constant 0 : index
    %226 = vector.load %arg6[%c5, %c0_63] : memref<8x128xf32, #tpu.memory_space<vmem>>, vector<1x128xf32>
    tpu.vector_store %arg6[%c5, %c0_63], %225 {strides = array<i32>} : memref<8x128xf32, #tpu.memory_space<vmem>>, vector<1x128xf32>,
    %c8_i32_64 = arith.constant 8 : i32
    %227 = arith.muli %arg0, %c8_i32_64 : i32
    %c6_i32 = arith.constant 6 : i32
    %228 = arith.addi %227, %c6_i32 : i32
    %229 = arith.index_cast %228 : i32 to index
    %230 = memref.load %arg1[%229] : memref<8xi32, #tpu.memory_space<smem>>
    %231 = arith.index_cast %230 : i32 to index
    %c0_65 = arith.constant 0 : index
    %c0_66 = arith.constant 0 : index
    %232 = vector.load %arg2[%231, %c0_65, %c0_66] : memref<32x1x384xf32, #tpu.memory_space<vmem>>, vector<1x1x384xf32>
    %233 = vector.shape_cast %232 : vector<1x1x384xf32> to vector<1x384xf32>
    %c0_67 = arith.constant 0 : index
    %c0_68 = arith.constant 0 : index
    %234 = vector.load %arg4[%c0_67, %c0_68] : memref<128x384xf32, #tpu.memory_space<vmem>>, vector<128x384xf32>
    %cst_69 = arith.constant dense<0.000000e+00> : vector<1x384xf32>
    %235 = tpu.matmul %225, %234, %cst_69 {dimension_numbers = #tpu.dot_dimension_numbers<[1], [0], [0], [1], [0, 0, 1, 1], [], []>} : vector<1x128xf32>, vector<128x384xf32>, vector<1x384xf32> -> vector<1x384xf32>
    %236 = vector.extract_strided_slice %233 {offsets = [0, 0], sizes = [1, 128], strides = [1, 1]} : vector<1x384xf32> to vector<1x128xf32>
    %237 = vector.extract_strided_slice %235 {offsets = [0, 0], sizes = [1, 128], strides = [1, 1]} : vector<1x384xf32> to vector<1x128xf32>
    %238 = arith.addf %236, %237 : vector<1x128xf32>
    %239 = arith.negf %238 : vector<1x128xf32>
    %240 = math.exp %239 : vector<1x128xf32>
    %cst_70 = arith.constant 1.000000e+00 : f32
    %241 = vector.broadcast %cst_70 : f32 to vector<1x128xf32>
    %242 = arith.addf %241, %240 : vector<1x128xf32>
    %243 = arith.divf %241, %242 : vector<1x128xf32>
    %244 = vector.extract_strided_slice %233 {offsets = [0, 128], sizes = [1, 128], strides = [1, 1]} : vector<1x384xf32> to vector<1x128xf32>
    %245 = vector.extract_strided_slice %235 {offsets = [0, 128], sizes = [1, 128], strides = [1, 1]} : vector<1x384xf32> to vector<1x128xf32>
    %246 = arith.addf %244, %245 : vector<1x128xf32>
    %247 = arith.negf %246 : vector<1x128xf32>
    %248 = math.exp %247 : vector<1x128xf32>
    %cst_71 = arith.constant 1.000000e+00 : f32
    %249 = vector.broadcast %cst_71 : f32 to vector<1x128xf32>
    %250 = arith.addf %249, %248 : vector<1x128xf32>
    %251 = arith.divf %249, %250 : vector<1x128xf32>
    %252 = vector.extract_strided_slice %233 {offsets = [0, 256], sizes = [1, 128], strides = [1, 1]} : vector<1x384xf32> to vector<1x128xf32>
    %253 = vector.extract_strided_slice %235 {offsets = [0, 256], sizes = [1, 128], strides = [1, 1]} : vector<1x384xf32> to vector<1x128xf32>
    %254 = arith.addf %253, %4 : vector<1x128xf32>
    %255 = arith.mulf %243, %254 : vector<1x128xf32>
    %256 = arith.addf %252, %255 : vector<1x128xf32>
    %257 = math.tanh %256 : vector<1x128xf32>
    %258 = arith.subf %225, %257 : vector<1x128xf32>
    %259 = arith.mulf %251, %258 : vector<1x128xf32>
    %260 = arith.addf %257, %259 : vector<1x128xf32>
    %c1_i32_72 = arith.constant 1 : i32
    %261 = arith.cmpi slt, %228, %c1_i32_72 : i32
    %262 = arith.select %261, %260, %225 : vector<1x128xf32>
    %c6 = arith.constant 6 : index
    %c0_73 = arith.constant 0 : index
    %263 = vector.load %arg6[%c6, %c0_73] : memref<8x128xf32, #tpu.memory_space<vmem>>, vector<1x128xf32>
    tpu.vector_store %arg6[%c6, %c0_73], %262 {strides = array<i32>} : memref<8x128xf32, #tpu.memory_space<vmem>>, vector<1x128xf32>,
    %c8_i32_74 = arith.constant 8 : i32
    %264 = arith.muli %arg0, %c8_i32_74 : i32
    %c7_i32 = arith.constant 7 : i32
    %265 = arith.addi %264, %c7_i32 : i32
    %266 = arith.index_cast %265 : i32 to index
    %267 = memref.load %arg1[%266] : memref<8xi32, #tpu.memory_space<smem>>
    %268 = arith.index_cast %267 : i32 to index
    %c0_75 = arith.constant 0 : index
    %c0_76 = arith.constant 0 : index
    %269 = vector.load %arg2[%268, %c0_75, %c0_76] : memref<32x1x384xf32, #tpu.memory_space<vmem>>, vector<1x1x384xf32>
    %270 = vector.shape_cast %269 : vector<1x1x384xf32> to vector<1x384xf32>
    %c0_77 = arith.constant 0 : index
    %c0_78 = arith.constant 0 : index
    %271 = vector.load %arg4[%c0_77, %c0_78] : memref<128x384xf32, #tpu.memory_space<vmem>>, vector<128x384xf32>
    %cst_79 = arith.constant dense<0.000000e+00> : vector<1x384xf32>
    %272 = tpu.matmul %262, %271, %cst_79 {dimension_numbers = #tpu.dot_dimension_numbers<[1], [0], [0], [1], [0, 0, 1, 1], [], []>} : vector<1x128xf32>, vector<128x384xf32>, vector<1x384xf32> -> vector<1x384xf32>
    %273 = vector.extract_strided_slice %270 {offsets = [0, 0], sizes = [1, 128], strides = [1, 1]} : vector<1x384xf32> to vector<1x128xf32>
    %274 = vector.extract_strided_slice %272 {offsets = [0, 0], sizes = [1, 128], strides = [1, 1]} : vector<1x384xf32> to vector<1x128xf32>
    %275 = arith.addf %273, %274 : vector<1x128xf32>
    %276 = arith.negf %275 : vector<1x128xf32>
    %277 = math.exp %276 : vector<1x128xf32>
    %cst_80 = arith.constant 1.000000e+00 : f32
    %278 = vector.broadcast %cst_80 : f32 to vector<1x128xf32>
    %279 = arith.addf %278, %277 : vector<1x128xf32>
    %280 = arith.divf %278, %279 : vector<1x128xf32>
    %281 = vector.extract_strided_slice %270 {offsets = [0, 128], sizes = [1, 128], strides = [1, 1]} : vector<1x384xf32> to vector<1x128xf32>
    %282 = vector.extract_strided_slice %272 {offsets = [0, 128], sizes = [1, 128], strides = [1, 1]} : vector<1x384xf32> to vector<1x128xf32>
    %283 = arith.addf %281, %282 : vector<1x128xf32>
    %284 = arith.negf %283 : vector<1x128xf32>
    %285 = math.exp %284 : vector<1x128xf32>
    %cst_81 = arith.constant 1.000000e+00 : f32
    %286 = vector.broadcast %cst_81 : f32 to vector<1x128xf32>
    %287 = arith.addf %286, %285 : vector<1x128xf32>
    %288 = arith.divf %286, %287 : vector<1x128xf32>
    %289 = vector.extract_strided_slice %270 {offsets = [0, 256], sizes = [1, 128], strides = [1, 1]} : vector<1x384xf32> to vector<1x128xf32>
    %290 = vector.extract_strided_slice %272 {offsets = [0, 256], sizes = [1, 128], strides = [1, 1]} : vector<1x384xf32> to vector<1x128xf32>
    %291 = arith.addf %290, %4 : vector<1x128xf32>
    %292 = arith.mulf %280, %291 : vector<1x128xf32>
    %293 = arith.addf %289, %292 : vector<1x128xf32>
    %294 = math.tanh %293 : vector<1x128xf32>
    %295 = arith.subf %262, %294 : vector<1x128xf32>
    %296 = arith.mulf %288, %295 : vector<1x128xf32>
    %297 = arith.addf %294, %296 : vector<1x128xf32>
    %c1_i32_82 = arith.constant 1 : i32
    %298 = arith.cmpi slt, %265, %c1_i32_82 : i32
    %299 = arith.select %298, %297, %262 : vector<1x128xf32>
    %c7 = arith.constant 7 : index
    %c0_83 = arith.constant 0 : index
    %300 = vector.load %arg6[%c7, %c0_83] : memref<8x128xf32, #tpu.memory_space<vmem>>, vector<1x128xf32>
    tpu.vector_store %arg6[%c7, %c0_83], %299 {strides = array<i32>} : memref<8x128xf32, #tpu.memory_space<vmem>>, vector<1x128xf32>,
    %c0_84 = arith.constant 0 : index
    %c0_85 = arith.constant 0 : index
    %301 = vector.load %arg7[%c0_84, %c0_85] : memref<1x128xf32, #tpu.memory_space<vmem>>, vector<1x128xf32>
    tpu.vector_store %arg7[%c0_84, %c0_85], %299 {strides = array<i32>} : memref<1x128xf32, #tpu.memory_space<vmem>>, vector<1x128xf32>,
    return
  }
  func.func @transform_0(%arg0: i32, %arg1: memref<8xi32, #tpu.memory_space<smem>>) -> (i32, i32, i32) {
    %c0_i32 = arith.constant 0 : i32
    %c0_i32_0 = arith.constant 0 : i32
    %c0_i32_1 = arith.constant 0 : i32
    %c0_i32_2 = arith.constant 0 : i32
    return %c0_i32, %c0_i32_0, %c0_i32_1 : i32, i32, i32
  }
  func.func @transform_1(%arg0: i32, %arg1: memref<8xi32, #tpu.memory_space<smem>>) -> (i32, i32) {
    %c0_i32 = arith.constant 0 : i32
    %c0_i32_0 = arith.constant 0 : i32
    %c0_i32_1 = arith.constant 0 : i32
    return %c0_i32, %c0_i32_0 : i32, i32
  }
  func.func @transform_2(%arg0: i32, %arg1: memref<8xi32, #tpu.memory_space<smem>>) -> (i32, i32) {
    %c0_i32 = arith.constant 0 : i32
    %c0_i32_0 = arith.constant 0 : i32
    %c0_i32_1 = arith.constant 0 : i32
    return %c0_i32, %c0_i32_0 : i32, i32
  }
  func.func @transform_3(%arg0: i32, %arg1: memref<8xi32, #tpu.memory_space<smem>>) -> (i32, i32) {
    %c0_i32 = arith.constant 0 : i32
    %c0_i32_0 = arith.constant 0 : i32
    %c0_i32_1 = arith.constant 0 : i32
    return %c0_i32, %c0_i32_0 : i32, i32
  }
  func.func @transform_4(%arg0: i32, %arg1: memref<8xi32, #tpu.memory_space<smem>>) -> (i32, i32) {
    %c0_i32 = arith.constant 0 : i32
    %c0_i32_0 = arith.constant 0 : i32
    return %arg0, %c0_i32 : i32, i32
  }
}

</mosaic_0001>

<bundles_post_ra>
// kernel: tpu_custom_call.1
= control target key start
LH: loop header
LB: loop body
LE: loop exit
PB: predicated region body
PF: predicated region fallthrough
CT: control target
= control target key end

     0   :  { %s1603_s21 = smov [#allocation4]   ;;  %s2273_s0 = inlined_call_operand.hbm [shape: s32[8], index: 0, kind: input, shape index: {}]   ;;  %s2274_s1 = inlined_call_operand.hbm [shape: f32[32,1,384], index: 1, kind: input, shape index: {}]   ;;  %s2275_s2 = inlined_call_operand.vmem [shape: f32[1,128], index: 2, kind: input, shape index: {}]   ;;  %s2276_s3 = inlined_call_operand.hbm [shape: f32[128,384], index: 3, kind: input, shape index: {}]   ;;  %s2277_s4 = inlined_call_operand.vmem [shape: f32[1,128], index: 4, kind: input, shape index: {}]   ;;  %s2278_s5 = inlined_call_operand.hbm [shape: f32[8,128], index: 5, kind: output, shape index: {}]  }
   0x1   :  { %s11_s20 = sshll.u32 %s2273_s0, 4  ;;  %s12_s20 = int_to_ptr.hbm [resolvable:$true] %s11_s20 }
   0x2   :  { %14 = dma.hbm_to_smem %s12_s20, 16, %s1603_s21, [#allocation3] }
   0x3   :  { %1595 = dma.done.wait [#allocation3], 16 }
   0x4   :  { %1596 = vsyncadd [#allocation3], 4294967280 }
   0x5   :  { %17 = sfence }
   0x6   :  { %18 = vsyncpa [#allocation6], 0 }
   0x7   :  { %19 = vsyncpa [#allocation9], 0 }
   0x8   :  { %20 = vsyncpa [#allocation7], 0  ;;  %s25_s24 = sshll.u32 %s2274_s1, 4  ;;  %s1604_s25 = smov [#allocation5]   ;;  %s26_s24 = int_to_ptr.hbm [resolvable:$true] %s25_s24 }
   0x9   :  { %s27_s26 = sshll.u32 %s1604_s25, 4  ;;  %s40_s0 = sshll.u32 %s2276_s3, 4  ;;  %s28_s26 = int_to_ptr.vmem [resolvable:$true] %s27_s26  ;;  %s41_s0 = int_to_ptr.hbm [resolvable:$true] %s40_s0 }
   0xa   :  { %s1605_s29 = smov 48   ;;  %s1606_s30 = smov 3  }
   0xb   :  { %33 = dma.hbm_to_vmem [thread:$0]  %s26_s24, 1536, %s28_s26, [#allocation6], %s1605_s29, %s1605_s29, %s1606_s30  }
   0xc   :  { %s1607_s6 = smov [#allocation8]   ;;  %s1608_s8 = smov 384  }
   0xd   :  { %s42_s7 = sshll.u32 %s1607_s6, 4  ;;  %s1609_s9 = smov 24   ;;  %s43_s7 = int_to_ptr.vmem [resolvable:$true] %s42_s7 }
   0xe   :  { %48 = dma.hbm_to_vmem [thread:$0]  %s41_s0, 6144, %s43_s7, [#allocation9], %s1608_s8, %s1608_s8, %s1609_s9  }
   0xf   :  { %1597 = dma.done.wait [#allocation6], 1536  }
  0x10   :  { %1598 = vsyncadd [#allocation6], 4294965760 }
  0x11   :  { %1599 = dma.done.wait [#allocation9], 6144  }
  0x12   :  { %1600 = vsyncadd [#allocation9], 4294961152  ;;  %v1650_v0 = vld [vmem:[#allocation8 + $0x168] sm:$0xff]  ;;  %v1652_v1 = vld [vmem:[#allocation8 + $0x170] sm:$0xff]  ;;  %s1443_s17 = sshll.u32 %s2278_s5, 4  ;;  %s1444_s17 = int_to_ptr.hbm [resolvable:$true] %s1443_s17 }
  0x13   :  { %v1654_v2 = vld [vmem:[#allocation8 + $0x150] sm:$0xff]  ;;  %120 = vmatpush.msra.mxu0 %v1650_v0  ;;  %140 = vmatpush.msra.mxu1 %v1652_v1  ;;  %v1658_v3 = vld [vmem:[#allocation8 + $0x158] sm:$0xff]  ;;  %v1662_v5 = vld [vmem:[#allocation8 + $0x140] sm:$0xff] }
  0x14   :  { %v1660_v4 = vld [vmem:[#allocation8 + $0x138] sm:$0xff]  ;;  %291 = vmatpush.msra.mxu3 %v1650_v0  ;;  %v1667_v6 = vld [vmem:[#allocation8 + $0x120] sm:$0xff]  ;;  %v1669_v7 = vld [vmem:[#allocation8 + $0x128] sm:$0xff] }
  0x15   :  { %121 = vmatpush.msra.mxu0 %v1654_v2  ;;  %141 = vmatpush.msra.mxu1 %v1658_v3  ;;  %v1674_v8 = vld [vmem:[#allocation8 + $0x108] sm:$0xff]  ;;  %v1676_v9 = vld [vmem:[#allocation8 + $0x110] sm:$0xff]  ;;  %v1683_v11 = vld [vmem:[#allocation8 + $0xf8] sm:$0xff] }
  0x16   :  { %292 = vmatpush.msra.mxu3 %v1654_v2  ;;  %v1681_v10 = vld [vmem:[#allocation8 + $0xf0] sm:$0xff]  ;;  %v1685_v12 = vld [vmem:[#allocation8 + $0x178] sm:$0xff]  ;;  %v1690_v13 = vld [vmem:[#allocation8 + $0x160] sm:$0xff] }
  0x17   :  { %122 = vmatpush.msra.mxu0 %v1660_v4  ;;  %142 = vmatpush.msra.mxu1 %v1662_v5  ;;  %v1692_v14 = vld [vmem:[#allocation8 + $0xd8] sm:$0xff]  ;;  %v1694_v15 = vld [vmem:[#allocation8 + $0xe0] sm:$0xff]  ;;  %v1700_v16 = vld [vmem:[#allocation8 + $0x148] sm:$0xff] }
  0x18   :  { %293 = vmatpush.msra.mxu3 %v1660_v4  ;;  %160 = vmatpush.msra.mxu2 %v1685_v12  ;;  %v1702_v17 = vld [vmem:[#allocation8 + $0xc0] sm:$0xff]  ;;  %v1704_v18 = vld [vmem:[#allocation8 + $0xc8] sm:$0xff]  ;;  %v63_v19 = vld [vmem:[%s2275_s2] sm:$0x1]  ;;  %s68_s2 = sld [smem:[#allocation4]] }
  0x19   :  { %123 = vmatpush.msra.mxu0 %v1667_v6  ;;  %143 = vmatpush.msra.mxu1 %v1669_v7  ;;  %v1713_v20 = vld [vmem:[#allocation8 + $0x130] sm:$0xff]  ;;  %64 = vst [vmem:[#allocation2] sm:$0x1] %v63_v19  ;;  %v1715_v21 = vld [vmem:[#allocation8 + $0xa8] sm:$0xff]  ;;  %v1723_v23 = vld [vmem:[#allocation8 + $0x118] sm:$0xff] }
  0x1a   :  { %294 = vmatpush.msra.mxu3 %v1667_v6  ;;  %161 = vmatpush.msra.mxu2 %v1690_v13  ;;  %v1717_v22 = vld [vmem:[#allocation8 + $0xb0] sm:$0xff]  ;;  %v1727_v25 = vld [vmem:[#allocation8 + $0x98] sm:$0xff]  ;;  %v1733_v26 = vld [vmem:[#allocation8 + $0x100] sm:$0xff] }
  0x1b   :  { %124 = vmatpush.msra.mxu0 %v1674_v8  ;;  %144 = vmatpush.msra.mxu1 %v1676_v9  ;;  %v1725_v24 = vld [vmem:[#allocation8 + $0x90] sm:$0xff]  ;;  %v1735_v27 = vld [vmem:[#allocation8 + $0x78] sm:$0xff]  ;;  %v1737_v28 = vld [vmem:[#allocation8 + $0x80] sm:$0xff] }
  0x1c   :  { %295 = vmatpush.msra.mxu3 %v1674_v8  ;;  %162 = vmatpush.msra.mxu2 %v1700_v16  ;;  %v1743_v29 = vld [vmem:[#allocation8 + $0xe8] sm:$0xff]  ;;  %v1745_v30 = vld [vmem:[#allocation8 + $0x60] sm:$0xff]  ;;  %v1753_v32 = vld [vmem:[#allocation8 + $0xd0] sm:$0xff] }
  0x1d   :  { %125 = vmatpush.msra.mxu0 %v1681_v10  ;;  %145 = vmatpush.msra.mxu1 %v1683_v11  ;;  %v1747_v31 = vld [vmem:[#allocation8 + $0x68] sm:$0xff]  ;;  %v1757_v34 = vld [vmem:[#allocation8 + $0x50] sm:$0xff]  ;;  %v1763_v35 = vld [vmem:[#allocation8 + $0xb8] sm:$0xff] }
  0x1e   :  { %296 = vmatpush.msra.mxu3 %v1681_v10  ;;  %163 = vmatpush.msra.mxu2 %v1713_v20  ;;  %v1755_v33 = vld [vmem:[#allocation8 + $0x48] sm:$0xff]  ;;  %v1765_v36 = vld [vmem:[#allocation8 + $0x30] sm:$0xff]  ;;  %v1767_v37 = vld [vmem:[#allocation8 + $0x38] sm:$0xff]  ;;  %s69_s10 = smul.u32 3, %s68_s2 }
  0x1f   :  { %126 = vmatpush.msra.mxu0 %v1692_v14  ;;  %146 = vmatpush.msra.mxu1 %v1694_v15  ;;  %2291 = vst [vmem:[#allocation15_spill] sm:$0xff] %v1765_v36  ;;  %v1773_v38 = vld [vmem:[#allocation8 + $0xa0] sm:$0xff]  ;;  %v1775_v39 = vld [vmem:[#allocation8 + $0x18] sm:$0xff]  ;;  %v1783_v41 = vld [vmem:[#allocation8 + $0x88] sm:$0xff] }
  0x20   :  { %297 = vmatpush.msra.mxu3 %v1692_v14  ;;  %164 = vmatpush.msra.mxu2 %v1723_v23  ;;  %2292 = vst [vmem:[#allocation16_spill] sm:$0xff] %v1767_v37  ;;  %v1777_v40 = vld [vmem:[#allocation8 + $0x20] sm:$0xff]  ;;  %v1787_v43 = vld [vmem:[#allocation8 + $0x8] sm:$0xff]  ;;  %v1793_v44 = vld [vmem:[#allocation2] sm:$0x1]  ;;  %s70_s11 = scalar_lea.vmem [#allocation5], %s69_s10 }
  0x21   :  { %127 = vmatpush.msra.mxu0 %v1702_v17  ;;  %147 = vmatpush.msra.mxu1 %v1704_v18  ;;  %2293 = vst [vmem:[#allocation17_spill] sm:$0xff] %v1775_v39  ;;  %v1785_v42 = vld [vmem:[#allocation8] sm:$0xff]  ;;  %v1796_v45 = vld [vmem:[#allocation8 + $0x70] sm:$0xff]  ;;  %v1803_v46 = vld [vmem:[#allocation8 + $0x58] sm:$0xff] }
  0x22   :  { %298 = vmatpush.msra.mxu3 %v1702_v17  ;;  %165 = vmatpush.msra.mxu2 %v1733_v26  ;;  %2294 = vst [vmem:[#allocation18_spill] sm:$0xff] %v1777_v40  ;;  %v1807_v47 = vld [vmem:[#allocation8 + $0x40] sm:$0xff]  ;;  %v1813_v48 = vld [vmem:[#allocation8 + $0x28] sm:$0xff]  ;;  %v1819_v49 = vld [vmem:[#allocation8 + $0x10] sm:$0xff] }
  0x23   :  { %128 = vmatpush.msra.mxu0 %v1715_v21  ;;  %148 = vmatpush.msra.mxu1 %v1717_v22  ;;  %2295 = vst [vmem:[#allocation19_spill] sm:$0xff] %v1785_v42  ;;  %v71_v50 = vld [vmem:[%s70_s11] sm:$0x7] }
  0x24   :  { %299 = vmatpush.msra.mxu3 %v1715_v21  ;;  %166 = vmatpush.msra.mxu2 %v1743_v29  ;;  %2296 = vst [vmem:[#allocation20_spill] sm:$0xff] %v1787_v43  ;;  %v201_v51 = vrot.slane %v71_v50, 1 }
  0x25   :  { %129 = vmatpush.msra.mxu0 %v1725_v24  ;;  %149 = vmatpush.msra.mxu1 %v1727_v25  ;;  %2297 = vst [vmem:[#allocation21_spill] sm:$0xff] %v1807_v47 }
  0x26   :  { %300 = vmatpush.msra.mxu3 %v1725_v24  ;;  %167 = vmatpush.msra.mxu2 %v1753_v32  ;;  %2298 = vst [vmem:[#allocation22_spill] sm:$0xff] %v1813_v48 }
  0x27   :  { %130 = vmatpush.msra.mxu0 %v1735_v27  ;;  %150 = vmatpush.msra.mxu1 %v1737_v28  ;;  %2299 = vst [vmem:[#allocation23_spill] sm:$0xff] %v1819_v49 }
  0x28   :  { %301 = vmatpush.msra.mxu3 %v1735_v27  ;;  %168 = vmatpush.msra.mxu2 %v1763_v35 }
  0x29   :  { %131 = vmatpush.msra.mxu0 %v1745_v30  ;;  %151 = vmatpush.msra.mxu1 %v1747_v31 }
  0x2a   :  { %302 = vmatpush.msra.mxu3 %v1745_v30  ;;  %169 = vmatpush.msra.mxu2 %v1773_v38 }
  0x2b   :  { %132 = vmatpush.msra.mxu0 %v1755_v33  ;;  %152 = vmatpush.msra.mxu1 %v1757_v34 }
  0x2c   :  { %303 = vmatpush.msra.mxu3 %v1755_v33  ;;  %170 = vmatpush.msra.mxu2 %v1783_v41 }
  0x2d   :  { %133 = vmatpush.msra.mxu0 %v1765_v36  ;;  %153 = vmatpush.msra.mxu1 %v1767_v37 }
  0x2e   :  { %304 = vmatpush.msra.mxu3 %v1765_v36  ;;  %171 = vmatpush.msra.mxu2 %v1796_v45 }
  0x2f   :  { %134 = vmatpush.msra.mxu0 %v1775_v39  ;;  %154 = vmatpush.msra.mxu1 %v1777_v40 }
  0x30   :  { %305 = vmatpush.msra.mxu3 %v1775_v39  ;;  %172 = vmatpush.msra.mxu2 %v1803_v46 }
  0x31   :  { %135 = vmatpush.msra.mxu0 %v1785_v42  ;;  %155 = vmatpush.msra.mxu1 %v1787_v43 }
  0x32   :  { %136 = vmatmul.f32.vlgmr.msra.gmra.mxu0 %v1793_v44  ;;  %156 = vmatmul.f32.vlgmr.msra.gmra.mxu1 %v1793_v44 }
  0x33   :  { %311 = vmatpush.msrb.mxu0 %v1652_v1  ;;  %331 = vmatpush.msrb.mxu1 %v1685_v12 }
  0x34   :  { %306 = vmatpush.msra.mxu3 %v1785_v42  ;;  %173 = vmatpush.msra.mxu2 %v1807_v47 }
  0x35   :  { %312 = vmatpush.msrb.mxu0 %v1658_v3  ;;  %332 = vmatpush.msrb.mxu1 %v1690_v13 }
  0x36   :  { %482 = vmatpush.msrb.mxu3 %v1652_v1  ;;  %174 = vmatpush.msra.mxu2 %v1813_v48 }
  0x37   :  { %313 = vmatpush.msrb.mxu0 %v1662_v5  ;;  %333 = vmatpush.msrb.mxu1 %v1700_v16 }
  0x38   :  { %483 = vmatpush.msrb.mxu3 %v1658_v3  ;;  %175 = vmatpush.msra.mxu2 %v1819_v49 }
  0x39   :  { %314 = vmatpush.msrb.mxu0 %v1669_v7  ;;  %334 = vmatpush.msrb.mxu1 %v1713_v20 }
  0x3a   :  { %484 = vmatpush.msrb.mxu3 %v1662_v5  ;;  %176 = vmatmul.f32.vlgmr.msra.gmra.mxu2 %v1793_v44 }
  0x3b   :  { %315 = vmatpush.msrb.mxu0 %v1676_v9  ;;  %335 = vmatpush.msrb.mxu1 %v1723_v23 }
  0x3c   :  { %462 = vmatpush.msrb.mxu2 %v1650_v0  ;;  %485 = vmatpush.msrb.mxu3 %v1669_v7 }
  0x3d   :  { %316 = vmatpush.msrb.mxu0 %v1683_v11  ;;  %336 = vmatpush.msrb.mxu1 %v1733_v26 }
  0x3e   :  { %463 = vmatpush.msrb.mxu2 %v1654_v2  ;;  %486 = vmatpush.msrb.mxu3 %v1676_v9 }
  0x3f   :  { %317 = vmatpush.msrb.mxu0 %v1694_v15  ;;  %337 = vmatpush.msrb.mxu1 %v1743_v29 }
  0x40   :  { %464 = vmatpush.msrb.mxu2 %v1660_v4  ;;  %487 = vmatpush.msrb.mxu3 %v1683_v11 }
  0x41   :  { %318 = vmatpush.msrb.mxu0 %v1704_v18  ;;  %338 = vmatpush.msrb.mxu1 %v1753_v32 }
  0x42   :  { %465 = vmatpush.msrb.mxu2 %v1667_v6  ;;  %488 = vmatpush.msrb.mxu3 %v1694_v15 }
  0x43   :  { %319 = vmatpush.msrb.mxu0 %v1717_v22  ;;  %339 = vmatpush.msrb.mxu1 %v1763_v35 }
  0x44   :  { %466 = vmatpush.msrb.mxu2 %v1674_v8  ;;  %489 = vmatpush.msrb.mxu3 %v1704_v18 }
  0x45   :  { %320 = vmatpush.msrb.mxu0 %v1727_v25  ;;  %340 = vmatpush.msrb.mxu1 %v1773_v38 }
  0x46   :  { %467 = vmatpush.msrb.mxu2 %v1681_v10  ;;  %490 = vmatpush.msrb.mxu3 %v1717_v22 }
  0x47   :  { %321 = vmatpush.msrb.mxu0 %v1737_v28  ;;  %341 = vmatpush.msrb.mxu1 %v1783_v41 }
  0x48   :  { %468 = vmatpush.msrb.mxu2 %v1692_v14  ;;  %491 = vmatpush.msrb.mxu3 %v1727_v25 }
  0x49   :  { %322 = vmatpush.msrb.mxu0 %v1747_v31  ;;  %342 = vmatpush.msrb.mxu1 %v1796_v45 }
  0x4a   :  { %469 = vmatpush.msrb.mxu2 %v1702_v17  ;;  %492 = vmatpush.msrb.mxu3 %v1737_v28 }
  0x4b   :  { %323 = vmatpush.msrb.mxu0 %v1757_v34  ;;  %343 = vmatpush.msrb.mxu1 %v1803_v46 }
  0x4c   :  { %470 = vmatpush.msrb.mxu2 %v1715_v21  ;;  %493 = vmatpush.msrb.mxu3 %v1747_v31 }
  0x4d   :  { %324 = vmatpush.msrb.mxu0 %v1767_v37  ;;  %344 = vmatpush.msrb.mxu1 %v1807_v47 }
  0x4e   :  { %471 = vmatpush.msrb.mxu2 %v1725_v24  ;;  %494 = vmatpush.msrb.mxu3 %v1757_v34 }
  0x4f   :  { %325 = vmatpush.msrb.mxu0 %v1777_v40  ;;  %345 = vmatpush.msrb.mxu1 %v1813_v48 }
  0x50   :  { %472 = vmatpush.msrb.mxu2 %v1735_v27  ;;  %495 = vmatpush.msrb.mxu3 %v1767_v37 }
  0x51   :  { %326 = vmatpush.msrb.mxu0 %v1787_v43  ;;  %346 = vmatpush.msrb.mxu1 %v1819_v49 }
  0x52   :  { %473 = vmatpush.msrb.mxu2 %v1745_v30  ;;  %496 = vmatpush.msrb.mxu3 %v1777_v40 }
  0x53   :  { %502 = vmatpush.msra.mxu0 %v1685_v12  ;;  %633 = vmatpush.msra.mxu1 %v1650_v0 }
  0x54   :  { %474 = vmatpush.msrb.mxu2 %v1755_v33  ;;  %497 = vmatpush.msrb.mxu3 %v1787_v43 }
  0x55   :  { %503 = vmatpush.msra.mxu0 %v1690_v13  ;;  %634 = vmatpush.msra.mxu1 %v1654_v2 }
  0x56   :  { %475 = vmatpush.msrb.mxu2 %v1765_v36 }
  0x57   :  { %504 = vmatpush.msra.mxu0 %v1700_v16  ;;  %635 = vmatpush.msra.mxu1 %v1660_v4 }
  0x58   :  { %476 = vmatpush.msrb.mxu2 %v1775_v39 }
  0x59   :  { %505 = vmatpush.msra.mxu0 %v1713_v20  ;;  %636 = vmatpush.msra.mxu1 %v1667_v6 }
  0x5a   :  { %477 = vmatpush.msrb.mxu2 %v1785_v42 }
  0x5b   :  { %506 = vmatpush.msra.mxu0 %v1723_v23  ;;  %637 = vmatpush.msra.mxu1 %v1674_v8 }
  0x5c   :  { %653 = vmatpush.msra.mxu2 %v1652_v1 }
  0x5d   :  { %507 = vmatpush.msra.mxu0 %v1733_v26  ;;  %638 = vmatpush.msra.mxu1 %v1681_v10 }
  0x5e   :  { %654 = vmatpush.msra.mxu2 %v1658_v3 }
  0x5f   :  { %508 = vmatpush.msra.mxu0 %v1743_v29  ;;  %639 = vmatpush.msra.mxu1 %v1692_v14 }
  0x60   :  { %655 = vmatpush.msra.mxu2 %v1662_v5 }
  0x61   :  { %509 = vmatpush.msra.mxu0 %v1753_v32  ;;  %640 = vmatpush.msra.mxu1 %v1702_v17 }
  0x62   :  { %656 = vmatpush.msra.mxu2 %v1669_v7 }
  0x63   :  { %510 = vmatpush.msra.mxu0 %v1763_v35  ;;  %641 = vmatpush.msra.mxu1 %v1715_v21 }
  0x64   :  { %657 = vmatpush.msra.mxu2 %v1676_v9 }
  0x65   :  { %511 = vmatpush.msra.mxu0 %v1773_v38  ;;  %642 = vmatpush.msra.mxu1 %v1725_v24 }
  0x66   :  { %658 = vmatpush.msra.mxu2 %v1683_v11 }
  0x67   :  { %512 = vmatpush.msra.mxu0 %v1783_v41  ;;  %643 = vmatpush.msra.mxu1 %v1735_v27 }
  0x68   :  { %659 = vmatpush.msra.mxu2 %v1694_v15 }
  0x69   :  { %513 = vmatpush.msra.mxu0 %v1796_v45  ;;  %644 = vmatpush.msra.mxu1 %v1745_v30 }
  0x6a   :  { %660 = vmatpush.msra.mxu2 %v1704_v18 }
  0x6b   :  { %514 = vmatpush.msra.mxu0 %v1803_v46  ;;  %645 = vmatpush.msra.mxu1 %v1755_v33 }
  0x6c   :  { %661 = vmatpush.msra.mxu2 %v1717_v22 }
  0x6d   :  { %515 = vmatpush.msra.mxu0 %v1807_v47  ;;  %646 = vmatpush.msra.mxu1 %v1765_v36 }
  0x6e   :  { %662 = vmatpush.msra.mxu2 %v1727_v25 }
  0x6f   :  { %516 = vmatpush.msra.mxu0 %v1813_v48  ;;  %647 = vmatpush.msra.mxu1 %v1775_v39 }
  0x70   :  { %663 = vmatpush.msra.mxu2 %v1737_v28 }
  0x71   :  { %517 = vmatpush.msra.mxu0 %v1819_v49  ;;  %648 = vmatpush.msra.mxu1 %v1785_v42  ;;  %v225_v49 = vrot.slane %v71_v50, 2 }
  0x72   :  { %664 = vmatpush.msra.mxu2 %v1747_v31 }
  0x74   :  { %665 = vmatpush.msra.mxu2 %v1757_v34 }
  0x76   :  { %666 = vmatpush.msra.mxu2 %v1767_v37 }
  0x78   :  { %667 = vmatpush.msra.mxu2 %v1777_v40 }
  0x7a   :  { %668 = vmatpush.msra.mxu2 %v1787_v43 }
  0xaf   :  { %v137_v52 = vpop.f32.mrf.mxu0  ;;  %v157_v53 = vpop.f32.mrf.mxu1 }
  0xb0   :  { %v180_v54 = vadd.f32 %v137_v52, %v71_v50  ;;  %v203_v55 = vadd.f32 %v201_v51, %v157_v53  ;;  %v66_v52 = vld [vmem:[%s2277_s4] sm:$0x1]  ;;  %s1610_s4 = smov [#allocation10]  }
  0xb1   :  { %s1441_s14 = sshll.u32 %s1610_s4, 4  ;;  %s1442_s14 = int_to_ptr.vmem [resolvable:$true] %s1441_s14 }
  0xb2   :  { %v1470_v56 = vmul.f32 -1.442695, %v180_v54  ;;  %v1471_v57 = vmul.f32 -1.442695, %v203_v55 }
  0xb4   :  { %1501 = vpow2.f32 %v1470_v56 }
  0xb5   :  { %1503 = vpow2.f32 %v1471_v57 }
  0xba   :  { %v1502_v58 = vpop.eup %1501 }
  0xbb   :  { %v1504_v59 = vpop.eup %1503  ;;  %v184_v60 = vadd.f32 1.0, %v1502_v58 }
  0xbc   :  { %v207_v61 = vadd.f32 1.0, %v1504_v59 }
  0xbd   :  { %1505 = vrcp.f32 %v184_v60  ;;  %v177_v51 = vpop.f32.mrf.mxu2  ;;  %v196_v53 = vand.u32 2147483648, %v184_v60  ;;  %v194_v55 = vand.u32 2147483647, %v184_v60  ;;  %vm190_vm1 = vweird.f32 %v184_v60 }
  0xbe   :  { %1507 = vrcp.f32 %v207_v61  ;;  %v223_v57 = vadd.f32 %v177_v51, %v66_v52  ;;  %vm213_vm4 = vweird.f32 %v207_v61  ;;  %v219_v36 = vand.u32 2147483648, %v207_v61 }
  0xbf   :  { %v197_v59 = vor.u32 1.1754944e-38, %v196_v53  ;;  %vm195_vm3 = vcmp.eq.f32.partialorder %v194_v55, 8.507059e+37  ;;  %v217_v47 = vand.u32 2147483647, %v207_v61  ;;  %v2149_v53 = vld [vmem:[#allocation8 + $0x38] sm:$0xff]  ;;  %v2153_v55 = vld [vmem:[#allocation8 + $0x40] sm:$0xff] }
  0xc1   :  { %vm218_vm7 = vcmp.eq.f32.partialorder %v217_v47, 8.507059e+37  ;;  %v2133_v47 = vld [vmem:[#allocation8 + $0x70] sm:$0xff] }
  0xc3   :  { %v1506_v62 = vpop.eup %1505 }
  0xc4   :  { %v1508_v63 = vpop.eup %1507  ;;  %v186_v19 = vmul.f32 %v1506_v62, %v184_v60  ;;  %vm191_vm0 = vweird.f32 %v1506_v62 }
  0xc5   :  { %v209_v42 = vmul.f32 %v1508_v63, %v207_v61  ;;  %vm192_vm2 = vmor %vm190_vm1, %vm191_vm0  ;;  %vm214_vm5 = vweird.f32 %v1508_v63  ;;  %v2143_v61 = vld [vmem:[#allocation8 + $0x58] sm:$0xff] }
  0xc6   :  { %v187_v43 = vsub.f32 1.0, %v186_v19  ;;  %vm215_vm6 = vmor %vm213_vm4, %vm214_vm5 }
  0xc7   :  { %v210_v58 = vsub.f32 1.0, %v209_v42 }
  0xc8   :  { %v188_v54 = vmul.f32 %v1506_v62, %v187_v43 }
  0xc9   :  { %v211_v48 = vmul.f32 %v1508_v63, %v210_v58  ;;  %v2163_v58 = vld [vmem:[#allocation8 + $0x28] sm:$0xff] }
  0xca   :  { %v189_v56 = vadd.f32 %v1506_v62, %v188_v54  ;;  %v220_v54 = vor.u32 1.1754944e-38, %v219_v36  ;;  %v2103_v36 = vld [vmem:[#allocation8 + $0xb8] sm:$0xff] }
  0xcb   :  { %v212_v43 = vadd.f32 %v1508_v63, %v211_v48  ;;  %v2137_v48 = vld [vmem:[#allocation8 + $0x48] sm:$0xff] }
  0xcc   :  { %v193_v40 = vsel %vm192_vm2, %v1506_v62, %v189_v56  ;;  %v2157_v56 = vld [vmem:[#allocation8 + $0x18] sm:$0xff] }
  0xcd   :  { %v198_v19 = vsel %vm195_vm3, %v197_v59, %v193_v40  ;;  %v216_v60 = vsel %vm215_vm6, %v1508_v63, %v212_v43  ;;  %v2117_v40 = vld [vmem:[#allocation8 + $0x78] sm:$0xff]  ;;  %v2147_v63 = vld [vmem:[#allocation8 + $0x30] sm:$0xff]  ;;  %v2167_v59 = vld [vmem:[#allocation8] sm:$0xff] }
  0xce   :  { %v224_v39 = vmul.f32 %v223_v57, %v198_v19  ;;  %v221_v50 = vsel %vm218_vm7, %v220_v54, %v216_v60  ;;  %v2159_v57 = vld [vmem:[#allocation8 + $0x20] sm:$0xff]  ;;  %v2169_v19 = vld [vmem:[#allocation8 + $0x8] sm:$0xff]  ;;  %v2173_v43 = vld [vmem:[#allocation8 + $0x10] sm:$0xff] }
  0xd0   :  { %v227_v37 = vadd.f32 %v225_v49, %v224_v39  ;;  %v2113_v39 = vld [vmem:[#allocation8 + $0xa0] sm:$0xff]  ;;  %v2139_v49 = vld [vmem:[#allocation8 + $0x50] sm:$0xff] }
  0xd2   :  { %1509 = vtanh.f32 %v227_v37  ;;  %v2107_v37 = vld [vmem:[#allocation8 + $0x90] sm:$0xff] }
  0xd8   :  { %v1510_v42 = vpop.eup %1509 }
  0xd9   :  { %v229_v52 = vsub.f32 %v1793_v44, %v1510_v42  ;;  %v2123_v44 = vld [vmem:[#allocation8 + $0x88] sm:$0xff] }
  0xdb   :  { %v230_v62 = vmul.f32 %v229_v52, %v221_v50 }
  0xdd   :  { %v1934_v51 = vadd.f32 %v1510_v42, %v230_v62 }
  0xdf   :  { %1435 = vst [vmem:[#allocation2] sm:$0x1] %v1934_v51  ;;  %307 = vmatmul.f32.vlgmr.msra.gmra.mxu3 %v1934_v51  ;;  %327 = vmatmul.f32.vlgmr.msrb.gmra.mxu0 %v1934_v51 }
  0xe0   :  { %237 = vst [vmem:[#allocation10] sm:$0x1] %v1934_v51  ;;  %347 = vmatmul.f32.vlgmr.msrb.gmra.mxu1 %v1934_v51  ;;  %478 = vmatmul.f32.vlgmr.msrb.gmra.mxu2 %v1934_v51 }
  0xe1   :  { %408 = vst [vmem:[#allocation10 + $0x1] sm:$0x1] %v1934_v51  ;;  %673 = vmatpush.msra.mxu3 %v1685_v12  ;;  %804 = vmatpush.msrb.mxu0 %v1650_v0  ;;  %v2300_v0 = vld [vmem:[#allocation21_spill] sm:$0xff] }
  0xe2   :  { %579 = vst [vmem:[#allocation10 + $0x2] sm:$0x1] %v1934_v51  ;;  %824 = vmatpush.msrb.mxu1 %v1652_v1  ;;  %844 = vmatpush.msrb.mxu2 %v1685_v12  ;;  %v2301_v1 = vld [vmem:[#allocation15_spill] sm:$0xff]  ;;  %v2027_v12 = vld [vmem:[#allocation8 + $0x150] sm:$0xff] }
  0xe3   :  { %750 = vst [vmem:[#allocation10 + $0x3] sm:$0x1] %v1934_v51  ;;  %674 = vmatpush.msra.mxu3 %v1690_v13  ;;  %805 = vmatpush.msrb.mxu0 %v1654_v2  ;;  %v2302_v2 = vld [vmem:[#allocation16_spill] sm:$0xff] }
  0xe4   :  { %921 = vst [vmem:[#allocation10 + $0x4] sm:$0x1] %v1934_v51  ;;  %825 = vmatpush.msrb.mxu1 %v1658_v3  ;;  %845 = vmatpush.msrb.mxu2 %v1690_v13  ;;  %v2303_v3 = vld [vmem:[#allocation22_spill] sm:$0xff]  ;;  %v2029_v13 = vld [vmem:[#allocation8 + $0x158] sm:$0xff] }
  0xe5   :  { %1092 = vst [vmem:[#allocation10 + $0x5] sm:$0x1] %v1934_v51  ;;  %675 = vmatpush.msra.mxu3 %v1700_v16  ;;  %806 = vmatpush.msrb.mxu0 %v1660_v4  ;;  %v2304_v4 = vld [vmem:[#allocation17_spill] sm:$0xff] }
  0xe6   :  { %1263 = vst [vmem:[#allocation10 + $0x6] sm:$0x1] %v1934_v51  ;;  %826 = vmatpush.msrb.mxu1 %v1662_v5  ;;  %846 = vmatpush.msrb.mxu2 %v1700_v16  ;;  %v2305_v5 = vld [vmem:[#allocation18_spill] sm:$0xff] }
  0xe7   :  { %1434 = vst [vmem:[#allocation10 + $0x7] sm:$0x1] %v1934_v51  ;;  %676 = vmatpush.msra.mxu3 %v1713_v20  ;;  %807 = vmatpush.msrb.mxu0 %v1667_v6  ;;  %v2306_v6 = vld [vmem:[#allocation23_spill] sm:$0xff]  ;;  %v2039_v16 = vld [vmem:[#allocation8 + $0x140] sm:$0xff] }
  0xe8   :  { %827 = vmatpush.msrb.mxu1 %v1669_v7  ;;  %847 = vmatpush.msrb.mxu2 %v1713_v20  ;;  %v2307_v7 = vld [vmem:[#allocation19_spill] sm:$0xff]  ;;  %1446 = dma.vmem_to_hbm [thread:$0]  %s1442_s14, 128, %s1444_s17, [#allocation7]  }
  0xe9   :  { %498 = vmatmul.f32.vlgmr.msrb.gmra.mxu3 %v1934_v51  ;;  %518 = vmatmul.f32.vlgmr.msra.gmra.mxu0 %v1934_v51  ;;  %v2049_v20 = vld [vmem:[#allocation8 + $0x128] sm:$0xff] }
  0xea   :  { %649 = vmatmul.f32.vlgmr.msra.gmra.mxu1 %v1934_v51  ;;  %669 = vmatmul.f32.vlgmr.msra.gmra.mxu2 %v1934_v51 }
  0xeb   :  { %677 = vmatpush.msra.mxu3 %v1723_v23  ;;  %808 = vmatpush.msrb.mxu0 %v1674_v8  ;;  %v2308_v8 = vld [vmem:[#allocation20_spill] sm:$0xff] }
  0xec   :  { %828 = vmatpush.msrb.mxu1 %v1676_v9  ;;  %848 = vmatpush.msrb.mxu2 %v1723_v23  ;;  %v2017_v9 = vld [vmem:[#allocation8 + $0x168] sm:$0xff]  ;;  %v2059_v23 = vld [vmem:[#allocation8 + $0x110] sm:$0xff] }
  0xed   :  { %678 = vmatpush.msra.mxu3 %v1733_v26  ;;  %809 = vmatpush.msrb.mxu0 %v1681_v10  ;;  %v2019_v10 = vld [vmem:[#allocation8 + $0x170] sm:$0xff] }
  0xee   :  { %829 = vmatpush.msrb.mxu1 %v1683_v11  ;;  %849 = vmatpush.msrb.mxu2 %v1733_v26  ;;  %v2023_v11 = vld [vmem:[#allocation8 + $0x178] sm:$0xff] }
  0xef   :  { %679 = vmatpush.msra.mxu3 %v1743_v29  ;;  %810 = vmatpush.msrb.mxu0 %v1692_v14  ;;  %v2033_v14 = vld [vmem:[#allocation8 + $0x160] sm:$0xff]  ;;  %v2069_v26 = vld [vmem:[#allocation8 + $0xf8] sm:$0xff] }
  0xf0   :  { %830 = vmatpush.msrb.mxu1 %v1694_v15  ;;  %850 = vmatpush.msrb.mxu2 %v1743_v29  ;;  %v2037_v15 = vld [vmem:[#allocation8 + $0x138] sm:$0xff]  ;;  %v2079_v29 = vld [vmem:[#allocation8 + $0xe0] sm:$0xff] }
  0xf1   :  { %680 = vmatpush.msra.mxu3 %v1753_v32  ;;  %811 = vmatpush.msrb.mxu0 %v1702_v17  ;;  %v2043_v17 = vld [vmem:[#allocation8 + $0x148] sm:$0xff] }
  0xf2   :  { %831 = vmatpush.msrb.mxu1 %v1704_v18  ;;  %851 = vmatpush.msrb.mxu2 %v1753_v32  ;;  %v2047_v18 = vld [vmem:[#allocation8 + $0x120] sm:$0xff]  ;;  %v2089_v32 = vld [vmem:[#allocation8 + $0xc8] sm:$0xff] }
  0xf3   :  { %681 = vmatpush.msra.mxu3 %v1763_v35  ;;  %812 = vmatpush.msrb.mxu0 %v1715_v21  ;;  %v2053_v21 = vld [vmem:[#allocation8 + $0x130] sm:$0xff] }
  0xf4   :  { %832 = vmatpush.msrb.mxu1 %v1717_v22  ;;  %852 = vmatpush.msrb.mxu2 %v1763_v35  ;;  %v2057_v22 = vld [vmem:[#allocation8 + $0x108] sm:$0xff]  ;;  %v2099_v35 = vld [vmem:[#allocation8 + $0xb0] sm:$0xff] }
  0xf5   :  { %682 = vmatpush.msra.mxu3 %v1773_v38  ;;  %813 = vmatpush.msrb.mxu0 %v1725_v24  ;;  %v2063_v24 = vld [vmem:[#allocation8 + $0x118] sm:$0xff] }
  0xf6   :  { %833 = vmatpush.msrb.mxu1 %v1727_v25  ;;  %853 = vmatpush.msrb.mxu2 %v1773_v38  ;;  %v2067_v25 = vld [vmem:[#allocation8 + $0xf0] sm:$0xff]  ;;  %v2109_v38 = vld [vmem:[#allocation8 + $0x98] sm:$0xff] }
  0xf7   :  { %683 = vmatpush.msra.mxu3 %v1783_v41  ;;  %814 = vmatpush.msrb.mxu0 %v1735_v27  ;;  %v2073_v27 = vld [vmem:[#allocation8 + $0x100] sm:$0xff] }
  0xf8   :  { %834 = vmatpush.msrb.mxu1 %v1737_v28  ;;  %854 = vmatpush.msrb.mxu2 %v1783_v41  ;;  %v2077_v28 = vld [vmem:[#allocation8 + $0xd8] sm:$0xff]  ;;  %v2119_v41 = vld [vmem:[#allocation8 + $0x80] sm:$0xff] }
  0xf9   :  { %684 = vmatpush.msra.mxu3 %v1796_v45  ;;  %815 = vmatpush.msrb.mxu0 %v1745_v30  ;;  %v2083_v30 = vld [vmem:[#allocation8 + $0xe8] sm:$0xff] }
  0xfa   :  { %835 = vmatpush.msrb.mxu1 %v1747_v31  ;;  %855 = vmatpush.msrb.mxu2 %v1796_v45  ;;  %v2087_v31 = vld [vmem:[#allocation8 + $0xc0] sm:$0xff] }
  0xfb   :  { %685 = vmatpush.msra.mxu3 %v1803_v46  ;;  %816 = vmatpush.msrb.mxu0 %v1755_v33  ;;  %v2093_v33 = vld [vmem:[#allocation8 + $0xd0] sm:$0xff]  ;;  %v2127_v45 = vld [vmem:[#allocation8 + $0x60] sm:$0xff] }
  0xfc   :  { %836 = vmatpush.msrb.mxu1 %v1757_v34  ;;  %856 = vmatpush.msrb.mxu2 %v1803_v46  ;;  %v2097_v34 = vld [vmem:[#allocation8 + $0xa8] sm:$0xff] }
  0xfd   :  { %686 = vmatpush.msra.mxu3 %v2300_v0  ;;  %817 = vmatpush.msrb.mxu0 %v2301_v1  ;;  %v2129_v46 = vld [vmem:[#allocation8 + $0x68] sm:$0xff] }
  0xfe   :  { %837 = vmatpush.msrb.mxu1 %v2302_v2  ;;  %857 = vmatpush.msrb.mxu2 %v2300_v0 }
  0xff   :  { %687 = vmatpush.msra.mxu3 %v2303_v3  ;;  %818 = vmatpush.msrb.mxu0 %v2304_v4 }
 0x100   :  { %838 = vmatpush.msrb.mxu1 %v2305_v5  ;;  %858 = vmatpush.msrb.mxu2 %v2303_v3 }
 0x101   :  { %688 = vmatpush.msra.mxu3 %v2306_v6  ;;  %819 = vmatpush.msrb.mxu0 %v2307_v7 }
 0x102   :  { %839 = vmatpush.msrb.mxu1 %v2308_v8  ;;  %859 = vmatpush.msrb.mxu2 %v2306_v6 }
 0x103   :  { %689 = vmatmul.f32.vlgmr.msra.gmra.mxu3 %v1934_v51  ;;  %820 = vmatmul.f32.vlgmr.msrb.gmra.mxu0 %v1934_v51 }
 0x104   :  { %840 = vmatmul.f32.vlgmr.msrb.gmra.mxu1 %v1934_v51  ;;  %860 = vmatmul.f32.vlgmr.msrb.gmra.mxu2 %v1934_v51 }
 0x105   :  { %975 = vmatpush.msrb.mxu3 %v2017_v9  ;;  %995 = vmatpush.msra.mxu0 %v2019_v10 }
 0x106   :  { %1015 = vmatpush.msra.mxu1 %v2023_v11  ;;  %1146 = vmatpush.msra.mxu2 %v2017_v9 }
 0x107   :  { %976 = vmatpush.msrb.mxu3 %v2027_v12  ;;  %996 = vmatpush.msra.mxu0 %v2029_v13 }
 0x108   :  { %1016 = vmatpush.msra.mxu1 %v2033_v14  ;;  %1147 = vmatpush.msra.mxu2 %v2027_v12 }
 0x109   :  { %977 = vmatpush.msrb.mxu3 %v2037_v15  ;;  %997 = vmatpush.msra.mxu0 %v2039_v16 }
 0x10a   :  { %1017 = vmatpush.msra.mxu1 %v2043_v17  ;;  %1148 = vmatpush.msra.mxu2 %v2037_v15 }
 0x10b   :  { %978 = vmatpush.msrb.mxu3 %v2047_v18  ;;  %998 = vmatpush.msra.mxu0 %v2049_v20 }
 0x10c   :  { %1018 = vmatpush.msra.mxu1 %v2053_v21  ;;  %1149 = vmatpush.msra.mxu2 %v2047_v18 }
 0x10d   :  { %979 = vmatpush.msrb.mxu3 %v2057_v22  ;;  %999 = vmatpush.msra.mxu0 %v2059_v23 }
 0x10e   :  { %1019 = vmatpush.msra.mxu1 %v2063_v24  ;;  %1150 = vmatpush.msra.mxu2 %v2057_v22 }
 0x10f   :  { %980 = vmatpush.msrb.mxu3 %v2067_v25  ;;  %1000 = vmatpush.msra.mxu0 %v2069_v26 }
 0x110   :  { %1020 = vmatpush.msra.mxu1 %v2073_v27  ;;  %1151 = vmatpush.msra.mxu2 %v2067_v25 }
 0x111   :  { %981 = vmatpush.msrb.mxu3 %v2077_v28  ;;  %1001 = vmatpush.msra.mxu0 %v2079_v29 }
 0x112   :  { %1021 = vmatpush.msra.mxu1 %v2083_v30  ;;  %1152 = vmatpush.msra.mxu2 %v2077_v28 }
 0x113   :  { %982 = vmatpush.msrb.mxu3 %v2087_v31  ;;  %1002 = vmatpush.msra.mxu0 %v2089_v32 }
 0x114   :  { %1022 = vmatpush.msra.mxu1 %v2093_v33  ;;  %1153 = vmatpush.msra.mxu2 %v2087_v31 }
 0x115   :  { %983 = vmatpush.msrb.mxu3 %v2097_v34  ;;  %1003 = vmatpush.msra.mxu0 %v2099_v35 }
 0x116   :  { %1023 = vmatpush.msra.mxu1 %v2103_v36  ;;  %1154 = vmatpush.msra.mxu2 %v2097_v34 }
 0x117   :  { %984 = vmatpush.msrb.mxu3 %v2107_v37  ;;  %1004 = vmatpush.msra.mxu0 %v2109_v38 }
 0x118   :  { %1024 = vmatpush.msra.mxu1 %v2113_v39  ;;  %1155 = vmatpush.msra.mxu2 %v2107_v37 }
 0x119   :  { %985 = vmatpush.msrb.mxu3 %v2117_v40  ;;  %1005 = vmatpush.msra.mxu0 %v2119_v41 }
 0x11a   :  { %1025 = vmatpush.msra.mxu1 %v2123_v44  ;;  %1156 = vmatpush.msra.mxu2 %v2117_v40 }
 0x11b   :  { %986 = vmatpush.msrb.mxu3 %v2127_v45  ;;  %1006 = vmatpush.msra.mxu0 %v2129_v46 }
 0x11c   :  { %1026 = vmatpush.msra.mxu1 %v2133_v47  ;;  %1157 = vmatpush.msra.mxu2 %v2127_v45 }
 0x11d   :  { %987 = vmatpush.msrb.mxu3 %v2137_v48  ;;  %1007 = vmatpush.msra.mxu0 %v2139_v49 }
 0x11e   :  { %1027 = vmatpush.msra.mxu1 %v2143_v61  ;;  %1158 = vmatpush.msra.mxu2 %v2137_v48 }
 0x11f   :  { %988 = vmatpush.msrb.mxu3 %v2147_v63  ;;  %1008 = vmatpush.msra.mxu0 %v2149_v53 }
 0x120   :  { %1028 = vmatpush.msra.mxu1 %v2153_v55  ;;  %1159 = vmatpush.msra.mxu2 %v2147_v63 }
 0x121   :  { %989 = vmatpush.msrb.mxu3 %v2157_v56  ;;  %1009 = vmatpush.msra.mxu0 %v2159_v57 }
 0x122   :  { %1029 = vmatpush.msra.mxu1 %v2163_v58  ;;  %1160 = vmatpush.msra.mxu2 %v2157_v56 }
 0x123   :  { %990 = vmatpush.msrb.mxu3 %v2167_v59  ;;  %1010 = vmatpush.msra.mxu0 %v2169_v19 }
 0x124   :  { %1030 = vmatpush.msra.mxu1 %v2173_v43  ;;  %1161 = vmatpush.msra.mxu2 %v2167_v59 }
 0x125   :  { %991 = vmatmul.f32.vlgmr.msrb.gmra.mxu3 %v1934_v51  ;;  %1011 = vmatmul.f32.vlgmr.msra.gmra.mxu0 %v1934_v51 }
 0x126   :  { %1031 = vmatmul.f32.vlgmr.msra.gmra.mxu1 %v1934_v51  ;;  %1162 = vmatmul.f32.vlgmr.msra.gmra.mxu2 %v1934_v51 }
 0x127   :  { %1166 = vmatpush.msra.mxu3 %v2019_v10  ;;  %1186 = vmatpush.msrb.mxu0 %v2023_v11 }
 0x128   :  { %1317 = vmatpush.msrb.mxu1 %v2017_v9  ;;  %1337 = vmatpush.msrb.mxu2 %v2019_v10 }
 0x129   :  { %1167 = vmatpush.msra.mxu3 %v2029_v13  ;;  %1187 = vmatpush.msrb.mxu0 %v2033_v14 }
 0x12a   :  { %1318 = vmatpush.msrb.mxu1 %v2027_v12  ;;  %1338 = vmatpush.msrb.mxu2 %v2029_v13 }
 0x12b   :  { %1168 = vmatpush.msra.mxu3 %v2039_v16  ;;  %1188 = vmatpush.msrb.mxu0 %v2043_v17 }
 0x12c   :  { %1319 = vmatpush.msrb.mxu1 %v2037_v15  ;;  %1339 = vmatpush.msrb.mxu2 %v2039_v16 }
 0x12d   :  { %1169 = vmatpush.msra.mxu3 %v2049_v20  ;;  %1189 = vmatpush.msrb.mxu0 %v2053_v21 }
 0x12e   :  { %1320 = vmatpush.msrb.mxu1 %v2047_v18  ;;  %1340 = vmatpush.msrb.mxu2 %v2049_v20 }
 0x12f   :  { %1170 = vmatpush.msra.mxu3 %v2059_v23  ;;  %1190 = vmatpush.msrb.mxu0 %v2063_v24 }
 0x130   :  { %1321 = vmatpush.msrb.mxu1 %v2057_v22  ;;  %1341 = vmatpush.msrb.mxu2 %v2059_v23 }
 0x131   :  { %1171 = vmatpush.msra.mxu3 %v2069_v26  ;;  %1191 = vmatpush.msrb.mxu0 %v2073_v27 }
 0x132   :  { %1322 = vmatpush.msrb.mxu1 %v2067_v25  ;;  %1342 = vmatpush.msrb.mxu2 %v2069_v26 }
 0x133   :  { %1172 = vmatpush.msra.mxu3 %v2079_v29  ;;  %1192 = vmatpush.msrb.mxu0 %v2083_v30 }
 0x134   :  { %1323 = vmatpush.msrb.mxu1 %v2077_v28  ;;  %1343 = vmatpush.msrb.mxu2 %v2079_v29 }
 0x135   :  { %1173 = vmatpush.msra.mxu3 %v2089_v32  ;;  %1193 = vmatpush.msrb.mxu0 %v2093_v33 }
 0x136   :  { %1324 = vmatpush.msrb.mxu1 %v2087_v31  ;;  %1344 = vmatpush.msrb.mxu2 %v2089_v32 }
 0x137   :  { %1174 = vmatpush.msra.mxu3 %v2099_v35  ;;  %1194 = vmatpush.msrb.mxu0 %v2103_v36 }
 0x138   :  { %1325 = vmatpush.msrb.mxu1 %v2097_v34  ;;  %1345 = vmatpush.msrb.mxu2 %v2099_v35 }
 0x139   :  { %1175 = vmatpush.msra.mxu3 %v2109_v38  ;;  %1195 = vmatpush.msrb.mxu0 %v2113_v39 }
 0x13a   :  { %1326 = vmatpush.msrb.mxu1 %v2107_v37  ;;  %1346 = vmatpush.msrb.mxu2 %v2109_v38 }
 0x13b   :  { %1176 = vmatpush.msra.mxu3 %v2119_v41  ;;  %1196 = vmatpush.msrb.mxu0 %v2123_v44 }
 0x13c   :  { %1327 = vmatpush.msrb.mxu1 %v2117_v40  ;;  %1347 = vmatpush.msrb.mxu2 %v2119_v41 }
 0x13d   :  { %1177 = vmatpush.msra.mxu3 %v2129_v46  ;;  %1197 = vmatpush.msrb.mxu0 %v2133_v47 }
 0x13e   :  { %1328 = vmatpush.msrb.mxu1 %v2127_v45  ;;  %1348 = vmatpush.msrb.mxu2 %v2129_v46 }
 0x13f   :  { %1178 = vmatpush.msra.mxu3 %v2139_v49  ;;  %1198 = vmatpush.msrb.mxu0 %v2143_v61 }
 0x140   :  { %1329 = vmatpush.msrb.mxu1 %v2137_v48  ;;  %1349 = vmatpush.msrb.mxu2 %v2139_v49 }
 0x141   :  { %1179 = vmatpush.msra.mxu3 %v2149_v53  ;;  %1199 = vmatpush.msrb.mxu0 %v2153_v55 }
 0x142   :  { %1330 = vmatpush.msrb.mxu1 %v2147_v63  ;;  %1350 = vmatpush.msrb.mxu2 %v2149_v53 }
 0x143   :  { %1180 = vmatpush.msra.mxu3 %v2159_v57  ;;  %1200 = vmatpush.msrb.mxu0 %v2163_v58 }
 0x144   :  { %1331 = vmatpush.msrb.mxu1 %v2157_v56  ;;  %1351 = vmatpush.msrb.mxu2 %v2159_v57 }
 0x145   :  { %1181 = vmatpush.msra.mxu3 %v2169_v19  ;;  %1201 = vmatpush.msrb.mxu0 %v2173_v43 }
 0x146   :  { %1332 = vmatpush.msrb.mxu1 %v2167_v59  ;;  %1352 = vmatpush.msrb.mxu2 %v2169_v19 }
 0x147   :  { %1182 = vmatmul.f32.vlgmr.msra.gmra.mxu3 %v1934_v51  ;;  %1202 = vmatmul.f32.vlgmr.msrb.gmra.mxu0 %v1934_v51 }
 0x148   :  { %1333 = vmatmul.f32.vlgmr.msrb.gmra.mxu1 %v1934_v51  ;;  %1353 = vmatmul.f32.vlgmr.msrb.gmra.mxu2 %v1934_v51 }
 0x149   :  { %1357 = vmatpush.msrb.mxu3 %v2023_v11 }
 0x14b   :  { %1358 = vmatpush.msrb.mxu3 %v2033_v14 }
 0x14d   :  { %1359 = vmatpush.msrb.mxu3 %v2043_v17 }
 0x14f   :  { %1360 = vmatpush.msrb.mxu3 %v2053_v21 }
 0x151   :  { %1361 = vmatpush.msrb.mxu3 %v2063_v24 }
 0x153   :  { %1362 = vmatpush.msrb.mxu3 %v2073_v27 }
 0x155   :  { %1363 = vmatpush.msrb.mxu3 %v2083_v30 }
 0x157   :  { %1364 = vmatpush.msrb.mxu3 %v2093_v33 }
 0x159   :  { %1365 = vmatpush.msrb.mxu3 %v2103_v36 }
 0x15b   :  { %1366 = vmatpush.msrb.mxu3 %v2113_v39 }
 0x15c   :  { %v328_v54 = vpop.f32.mrf.mxu0 }
 0x15d   :  { %1367 = vmatpush.msrb.mxu3 %v2123_v44  ;;  %v348_v60 = vpop.f32.mrf.mxu1 }
 0x15f   :  { %1368 = vmatpush.msrb.mxu3 %v2133_v47 }
 0x161   :  { %1369 = vmatpush.msrb.mxu3 %v2143_v61 }
 0x162   :  { %v308_v42 = vpop.f32.mrf.mxu3 }
 0x163   :  { %1370 = vmatpush.msrb.mxu3 %v2153_v55  ;;  %v479_v52 = vpop.f32.mrf.mxu2 }
 0x165   :  { %1371 = vmatpush.msrb.mxu3 %v2163_v58 }
 0x166   :  { %v519_v50 = vpop.f32.mrf.mxu0 }
 0x167   :  { %1372 = vmatpush.msrb.mxu3 %v2173_v43  ;;  %v650_v62 = vpop.f32.mrf.mxu1 }
 0x168   :  { %1373 = vmatmul.f32.vlgmr.msrb.gmra.mxu3 %v1934_v51 }
 0x16c   :  { %v499_v0 = vpop.f32.mrf.mxu3 }
 0x16d   :  { %v670_v1 = vpop.f32.mrf.mxu2 }
 0x180   :  { %v821_v2 = vpop.f32.mrf.mxu0 }
 0x181   :  { %v841_v3 = vpop.f32.mrf.mxu1 }
 0x186   :  { %v690_v4 = vpop.f32.mrf.mxu3 }
 0x187   :  { %v861_v5 = vpop.f32.mrf.mxu2 }
 0x1a2   :  { %v1012_v6 = vpop.f32.mrf.mxu0 }
 0x1a3   :  { %v1032_v7 = vpop.f32.mrf.mxu1 }
 0x1a8   :  { %v992_v8 = vpop.f32.mrf.mxu3 }
 0x1a9   :  { %v1163_v9 = vpop.f32.mrf.mxu2 }
 0x1c4   :  { %v1203_v51 = vpop.f32.mrf.mxu0 }
 0x1c5   :  { %v1334_v10 = vpop.f32.mrf.mxu1 }
 0x1ca   :  { %v1183_v11 = vpop.f32.mrf.mxu3 }
 0x1cb   :  { %v1354_v12 = vpop.f32.mrf.mxu2 }
 0x1eb   :  { %v1374_v13 = vpop.f32.mrf.mxu3 }
 0x1ec   :  { %1601 = dma.done.wait [#allocation7], 128  }
 0x1ed   :  { %1602 = vsyncadd [#allocation7], 4294967168 }
 0x1ee   :  { %1451 = vsyncpa [#allocation6], 1 }
 0x1ef   :  { %1452 = vsyncpa [#allocation9], 1 }
 0x1f0   :  { %1453 = vsyncpa [#allocation7], 1 }

</bundles_post_ra>
